<compile_context>
chip_gen: v5e
topology: v5e:2x2
jax: 0.10.0
libtpu: 0.0.40
codegen_flags: <defaults>
</compile_context>

<pallas_src>
import functools

import jax
import jax.numpy as jnp
from jax import lax
from jax.experimental import pallas as pl
from jax.experimental.pallas import tpu as pltpu

BN_EPS = 1e-5

# MXU operand / HBM activation dtype. bf16 halves DMA bytes on all chips and
# doubles MXU throughput on v6e/v7x; accumulation stays f32 via
# preferred_element_type. Epilogue / blend math stays f32 (v5e VPU has no bf16).
MATMUL_DTYPE = jnp.bfloat16
STORE_DTYPE = jnp.bfloat16


def _query_vmem_limit_bytes():
    """~75% of physical VMEM: ~96 MiB on v5e/v6e (128 MiB), ~48 MiB on v7x (64 MiB)."""
    cap = 64 * 1024 * 1024  # conservative fallback (v7x-sized)
    try:
        cap = int(pltpu.get_tpu_info().vmem_capacity_bytes)
    except Exception:
        pass
    return max(32 * 1024 * 1024, min(cap * 3 // 4, 112 * 1024 * 1024))


VMEM_LIMIT_BYTES = _query_vmem_limit_bytes()
TILE_VMEM_BUDGET = int(VMEM_LIMIT_BYTES * 0.6)   # headroom for pipeline bufs + temporaries


def _compiler_params():
    return pltpu.CompilerParams(
        dimension_semantics=("parallel", "parallel"),
        vmem_limit_bytes=VMEM_LIMIT_BYTES,
    )


def _largest_divisor_at_most(total, target):
    t = max(1, min(int(total), int(target)))
    while total % t:
        t -= 1
    return t


def _rows_for_budget(H, per_row_bytes, fixed_bytes, budget_bytes):
    target = max(1, (budget_bytes - fixed_bytes) // max(int(per_row_bytes), 1))
    return _largest_divisor_at_most(H, target)


# ----------------------------- Pallas kernels -----------------------------

def _upsample2x_conv1x1_kernel(xc_ref, xt_ref, xb_ref, w_ref, shift_ref, o_ref):
    """Fused InterpConv row block, with the 1x1 conv commuted before the blend.

    xc_ref    : (1, TH, W, Cin)   low-res rows r0 .. r0+TH-1
    xt_ref    : (1, 1,  W, Cin)   clamped row r0-1 (index_map clamps at border)
    xb_ref    : (1, 1,  W, Cin)   clamped row r0+TH
    w_ref     : (Cin, Cup)        BN scale folded in (bf16)
    shift_ref : (1, Cup)          f32
    o_ref     : (1, 2*TH, 2*W, Cup)
    """
    TH, W, Cin = xc_ref.shape[1], xc_ref.shape[2], xc_ref.shape[3]
    Cup = o_ref.shape[3]

    # 1x1 conv on the LOW-res slab (TH+2 rows): 4x fewer MXU FLOPs than on the
    # upsampled tensor, and the halo rows give the (clamped) bilinear stencil.
    slab = jnp.concatenate([xt_ref[0], xc_ref[0], xb_ref[0]], axis=0)      # (TH+2, W, Cin)
    y = jnp.dot(slab.reshape((TH + 2) * W, Cin).astype(MATMUL_DTYPE),
                w_ref[...].astype(MATMUL_DTYPE),
                preferred_element_type=jnp.float32).reshape(TH + 2, W, Cup)

    prev, rows, nxt = y[:TH], y[1:TH + 1], y[2:]
    # Vertical x2: out[2r] = 0.75*y[r] + 0.25*y[r-1]; out[2r+1] = 0.75*y[r] + 0.25*y[r+1]
    v = jnp.stack([0.75 * rows + 0.25 * prev,
                   0.75 * rows + 0.25 * nxt], axis=1).reshape(2 * TH, W, Cup)
    # Horizontal x2 with edge clamp along W.
    left = jnp.concatenate([v[:, :1, :], v[:, :-1, :]], axis=1)
    right = jnp.concatenate([v[:, 1:, :], v[:, -1:, :]], axis=1)
    up = jnp.stack([0.75 * v + 0.25 * left,
                    0.75 * v + 0.25 * right], axis=2).reshape(2 * TH, 2 * W, Cup)

    out = jnp.maximum(up + shift_ref[...], 0.0)
    o_ref[...] = out.reshape(1, 2 * TH, 2 * W, Cup).astype(o_ref.dtype)


def _conv3x3_kernel(*args, num_inputs):
    """3x3 conv (pad=1, stride=1) over `num_inputs` channel-concatenated inputs
    (the concat is never materialized), + folded-BN shift + ReLU.

    For each input i: xc (1,TH,W,Cin_i), xt (1,1,W,Cin_i), xb (1,1,W,Cin_i)
    Then: w_0..w_{k-1} with shape (3, 3*Cin_i, Cout)  (dy, dx*Cin+ci, co)
          shift (1, Cout), out (1, TH, W, Cout).
    The 3 dx taps are folded into the matmul K dim; taps accumulate in a
    register value and the output is stored once.
    """
    x_refs = args[:3 * num_inputs]
    w_refs = args[3 * num_inputs:4 * num_inputs]
    shift_ref = args[4 * num_inputs]
    o_ref = args[4 * num_inputs + 1]

    TH, W, Cout = o_ref.shape[1], o_ref.shape[2], o_ref.shape[3]
    rb = pl.program_id(1)
    last = pl.num_programs(1) - 1

    acc = None
    for i in range(num_inputs):
        xc_ref, xt_ref, xb_ref = x_refs[3 * i: 3 * i + 3]
        w_ref = w_refs[i]
        Cin = xc_ref.shape[3]

        xc = xc_ref[0]                                                    # (TH, W, Cin)
        # Halo rows come clamped from the index_map; conv wants zero padding at
        # the image border -> zero just the single halo row there (cheap).
        top = jnp.where(rb == 0, jnp.zeros_like(xt_ref[0]), xt_ref[0])    # (1, W, Cin)
        bot = jnp.where(rb == last, jnp.zeros_like(xb_ref[0]), xb_ref[0])
        slab = jnp.concatenate([top, xc, bot], axis=0)                    # (TH+2, W, Cin)

        # K-packed patch: channels = [x[w-1] | x[w] | x[w+1]] with zero columns
        # at the image's left/right border.
        zcol = jnp.zeros((TH + 2, 1, Cin), slab.dtype)
        lft = jnp.concatenate([zcol, slab[:, :-1, :]], axis=1)
        rgt = jnp.concatenate([slab[:, 1:, :], zcol], axis=1)
        patch = jnp.concatenate([lft, slab, rgt], axis=-1)                # (TH+2, W, 3*Cin)

        for dy in range(3):
            p = patch[dy:dy + TH].reshape(TH * W, 3 * Cin)
            r = jnp.dot(p.astype(MATMUL_DTYPE), w_ref[dy].astype(MATMUL_DTYPE),
                        preferred_element_type=jnp.float32)
            acc = r if acc is None else acc + r

    y = acc + shift_ref[...]
    o_ref[...] = jnp.maximum(y, 0.0).reshape(1, TH, W, Cout).astype(o_ref.dtype)


# ----------------------------- wrappers -----------------------------

def upsample2x_conv1x1(x, w, shift, *, row_block=None):
    """InterpConv: bilinear x2 -> 1x1 conv -> BN(folded) -> ReLU. NHWC in/out."""
    N, H, W, Cin = x.shape
    Cup = w.shape[-1]
    ib = jnp.dtype(x.dtype).itemsize
    ob = jnp.dtype(STORE_DTYPE).itemsize
    wb = jnp.dtype(w.dtype).itemsize

    if row_block is not None:
        TH = _largest_divisor_at_most(H, row_block)
    else:
        per_row = (2 * W * Cin * ib            # center block, double-buffered
                   + 8 * W * Cup * ob          # output block (2 rows x 2W), double-buffered
                   + 4 * W * Cin * 4           # slab / cast temporaries (f32-equivalent)
                   + 16 * W * Cup * 4)         # y / v / left / right / up f32 temporaries
        fixed = 2 * Cin * Cup * wb + 6 * W * Cin * ib + (2 << 20)
        TH = _rows_for_budget(H, per_row, fixed, TILE_VMEM_BUDGET)

    grid = (N, H // TH)
    center_map = lambda n, rb: (n, rb, 0, 0)
    top_map = lambda n, rb: (n, jnp.maximum(rb * TH - 1, 0), 0, 0)
    bot_map = lambda n, rb: (n, jnp.minimum((rb + 1) * TH, H - 1), 0, 0)

    return pl.pallas_call(
        _upsample2x_conv1x1_kernel,
        out_shape=jax.ShapeDtypeStruct((N, 2 * H, 2 * W, Cup), STORE_DTYPE),
        grid=grid,
        in_specs=[
            pl.BlockSpec((1, TH, W, Cin), center_map),
            pl.BlockSpec((1, 1, W, Cin), top_map),
            pl.BlockSpec((1, 1, W, Cin), bot_map),
            pl.BlockSpec((Cin, Cup), lambda n, rb: (0, 0)),
            pl.BlockSpec((1, Cup), lambda n, rb: (0, 0)),
        ],
        out_specs=pl.BlockSpec((1, 2 * TH, 2 * W, Cup), lambda n, rb: (n, rb, 0, 0)),
        compiler_params=_compiler_params(),
    )(x, x, x, w, shift.reshape(1, Cup))


def conv3x3_bn_relu(xs, ws, shift, *, out_dtype, row_block=None):
    """Sum of 3x3 convs over the inputs in `xs` (== conv over their channel
    concat), + folded-BN shift + ReLU. NHWC, row-block tiled with 1-row halos."""
    N, H, W = xs[0].shape[0], xs[0].shape[1], xs[0].shape[2]
    Cout = ws[0].shape[-1]
    ob = jnp.dtype(out_dtype).itemsize

    if row_block is not None:
        TH = _largest_divisor_at_most(H, row_block)
    else:
        per_row = 2 * W * Cout * ob + 4 * W * Cout * 4
        fixed = 2 << 20
        for x, w in zip(xs, ws):
            Cin = x.shape[-1]
            ib = jnp.dtype(x.dtype).itemsize
            per_row += 2 * W * Cin * ib + 8 * W * Cin * ib   # center block + patch temporaries
            fixed += 2 * 9 * Cin * Cout * jnp.dtype(w.dtype).itemsize + 6 * W * Cin * ib
        TH = _rows_for_budget(H, per_row, fixed, TILE_VMEM_BUDGET)

    grid = (N, H // TH)
    center_map = lambda n, rb: (n, rb, 0, 0)
    top_map = lambda n, rb: (n, jnp.maximum(rb * TH - 1, 0), 0, 0)
    bot_map = lambda n, rb: (n, jnp.minimum((rb + 1) * TH, H - 1), 0, 0)

    inputs, in_specs = [], []
    for x in xs:
        Cin = x.shape[-1]
        inputs += [x, x, x]
        in_specs += [
            pl.BlockSpec((1, TH, W, Cin), center_map),
            pl.BlockSpec((1, 1, W, Cin), top_map),
            pl.BlockSpec((1, 1, W, Cin), bot_map),
        ]
    for w in ws:
        Cin = w.shape[2]
        w_packed = w.reshape(3, 3 * Cin, Cout)         # (dy, dx*Cin+ci, co)
        inputs.append(w_packed)
        in_specs.append(pl.BlockSpec((3, 3 * Cin, Cout), lambda n, rb: (0, 0, 0)))
    inputs.append(shift.reshape(1, Cout))
    in_specs.append(pl.BlockSpec((1, Cout), lambda n, rb: (0, 0)))

    return pl.pallas_call(
        functools.partial(_conv3x3_kernel, num_inputs=len(xs)),
        out_shape=jax.ShapeDtypeStruct((N, H, W, Cout), out_dtype),
        grid=grid,
        in_specs=in_specs,
        out_specs=pl.BlockSpec((1, TH, W, Cout), lambda n, rb: (n, rb, 0, 0)),
        compiler_params=_compiler_params(),
    )(*inputs)


# ----------------------------- parameters -----------------------------

def fold_bn(gamma, beta, running_mean, running_var, eps=BN_EPS):
    scale = gamma / jnp.sqrt(running_var + eps)
    shift = beta - running_mean * scale
    return scale, shift


def _bn_params(keys, ch):
    gamma = 1.0 + 0.1 * jax.random.normal(keys[0], (ch,), jnp.float32)
    beta = 0.05 * jax.random.normal(keys[1], (ch,), jnp.float32)
    rmean = 0.02 * jax.random.normal(keys[2], (ch,), jnp.float32)
    rvar = 1.0 + 0.1 * jax.random.uniform(keys[3], (ch,), jnp.float32)
    return fold_bn(gamma, beta, rmean, rvar)


def init_params(key, in_channels, skip_channels, out_channels):
    """Deterministic synthetic parameters (shapes follow the PyTorch module).
    Eval-mode BN scale is folded into the conv weights (epilogue = +shift, ReLU);
    weights stored bf16, shifts f32."""
    ks = jax.random.split(key, 16)
    p = {}
    # InterpConv 1x1 ConvModule: in_channels -> skip_channels (no conv bias, BN follows)
    w_up = 0.1 * jax.random.normal(ks[0], (in_channels, skip_channels), jnp.float32)
    scale_up, p['shift_up'] = _bn_params(ks[1:5], skip_channels)
    p['w_up'] = (w_up * scale_up[None, :]).astype(STORE_DTYPE)

    # BasicConvBlock conv1: 3x3, 2*skip_channels -> out_channels (HWIO),
    # split along input channels ([skip | upsampled]) so torch.cat is never built.
    w1 = 0.1 * jax.random.normal(ks[5], (3, 3, 2 * skip_channels, out_channels), jnp.float32)
    scale1, p['shift1'] = _bn_params(ks[6:10], out_channels)
    w1 = (w1 * scale1).astype(STORE_DTYPE)
    p['w1_skip'] = w1[:, :, :skip_channels, :]
    p['w1_up'] = w1[:, :, skip_channels:, :]

    # BasicConvBlock conv2: 3x3, out_channels -> out_channels
    w2 = 0.1 * jax.random.normal(ks[10], (3, 3, out_channels, out_channels), jnp.float32)
    scale2, p['shift2'] = _bn_params(ks[11:15], out_channels)
    p['w2'] = (w2 * scale2).astype(STORE_DTYPE)
    return p


# ----------------------------- forward -----------------------------

def up_conv_block_forward_nhwc(skip, x, params, *, up_row_block=None, conv_row_block=None):
    """UpConvBlock.forward(skip, x) with NHWC layout (native, no transposes)."""
    x = x.astype(STORE_DTYPE)
    skip = skip.astype(STORE_DTYPE)

    # self.upsample(x): InterpConv = bilinear x2 -> 1x1 conv -> BN -> ReLU (fused, commuted)
    x_up = upsample2x_conv1x1(x, params['w_up'], params['shift_up'], row_block=up_row_block)

    # torch.cat([skip, x], dim=1) + conv1: two accumulating 3x3 convs in one kernel;
    # conv1 intermediate kept in bf16 to halve HBM traffic into conv2.
    out = conv3x3_bn_relu([skip, x_up], [params['w1_skip'], params['w1_up']],
                          params['shift1'], out_dtype=STORE_DTYPE, row_block=conv_row_block)
    # conv2 (final output in f32)
    out = conv3x3_bn_relu([out], [params['w2']], params['shift2'],
                          out_dtype=jnp.float32, row_block=conv_row_block)
    return out


def up_conv_block_forward(skip_nchw, x_nchw, params, *, up_row_block=None, conv_row_block=None):
    """NCHW wrapper matching the PyTorch interface (NHWC is the native fast path)."""
    skip = jnp.transpose(skip_nchw, (0, 2, 3, 1))
    x = jnp.transpose(x_nchw, (0, 2, 3, 1))
    out = up_conv_block_forward_nhwc(skip, x, params,
                                     up_row_block=up_row_block, conv_row_block=conv_row_block)
    return jnp.transpose(out, (0, 3, 1, 2))


# ----------------------------- pure-JAX reference (validation) -----------------------------

def _bilinear_x2_ref(x_nhwc):
    """nn.Upsample(scale_factor=2, mode='bilinear', align_corners=False)."""
    N, H, W, C = x_nhwc.shape

    def idx(size):
        o = jnp.arange(2 * size, dtype=jnp.float32)
        src = jnp.clip(o / 2.0 - 0.25, 0.0, float(size - 1))
        i0 = jnp.floor(src).astype(jnp.int32)
        i1 = jnp.minimum(i0 + 1, size - 1)
        lam = src - i0.astype(jnp.float32)
        return i0, i1, lam

    i0, i1, lh = idx(H)
    j0, j1, lw = idx(W)
    rows = (x_nhwc[:, i0] * (1.0 - lh)[None, :, None, None]
            + x_nhwc[:, i1] * lh[None, :, None, None])
    return (rows[:, :, j0] * (1.0 - lw)[None, None, :, None]
            + rows[:, :, j1] * lw[None, None, :, None])


def reference_forward(skip_nchw, x_nchw, params):
    hi = jax.lax.Precision.HIGHEST
    skip = jnp.transpose(skip_nchw, (0, 2, 3, 1))
    x = jnp.transpose(x_nchw, (0, 2, 3, 1))

    w_up = params['w_up'].astype(jnp.float32)
    w1 = jnp.concatenate([params['w1_skip'], params['w1_up']], axis=2).astype(jnp.float32)
    w2 = params['w2'].astype(jnp.float32)

    x_up = _bilinear_x2_ref(x)
    x_up = jnp.maximum(
        jnp.einsum('nhwc,cd->nhwd', x_up, w_up, precision=hi) + params['shift_up'], 0.0)
    cat = jnp.concatenate([skip, x_up], axis=-1)

    def conv(inp, w, shift):
        y = lax.conv_general_dilated(inp, w, (1, 1), 'SAME',
                                     dimension_numbers=('NHWC', 'HWIO', 'NHWC'),
                                     precision=hi)
        return jnp.maximum(y + shift, 0.0)

    out = conv(cat, w1, params['shift1'])
    out = conv(out, w2, params['shift2'])
    return jnp.transpose(out, (0, 3, 1, 2))


# ----------------------------- demo -----------------------------

if __name__ == "__main__":
    key = jax.random.PRNGKey(0)
    in_channels, skip_channels, out_channels = 8, 4, 4
    N, H, W = 2, 8, 8                       # high-level (low-res) feature map
    k_skip, k_x, k_p = jax.random.split(key, 3)

    # skip: low-level high-res feature (2x spatial of x); x: high-level low-res feature
    skip = jax.random.normal(k_skip, (N, skip_channels, 2 * H, 2 * W), jnp.float32)
    x = jax.random.normal(k_x, (N, in_channels, H, W), jnp.float32)
    params = init_params(k_p, in_channels, skip_channels, out_channels)

    # Small row blocks so the multi-block + halo code paths are exercised at demo shapes.
    fwd = jax.jit(functools.partial(up_conv_block_forward, params=params,
                                    up_row_block=2, conv_row_block=4))
    out = fwd(skip, x)
    jax.block_until_ready(out)

    assert out.shape == (N, out_channels, 2 * H, 2 * W), out.shape
    assert bool(jnp.all(jnp.isfinite(out)))

    ref = jax.jit(functools.partial(reference_forward, params=params))(skip, x)
    max_err = float(jnp.max(jnp.abs(out - ref)))
    max_ref = float(jnp.max(jnp.abs(ref)))
    # bf16 activations/weights on the kernel path vs f32 reference -> relative-style tolerance.
    tol = 3e-2 * (1.0 + max_ref)
    assert max_err < tol, f"kernel/reference mismatch: max abs err = {max_err} (tol {tol})"
    print("KERNEL_OK")
</pallas_src>

<mosaic_0001>
module attributes {stable_mosaic.version = 11 : i64} {
  func.func @_upsample2x_conv1x1_kernel(%arg0: i32, %arg1: i32, %arg2: memref<1x2x8x8xbf16, #tpu.memory_space<vmem>>, %arg3: memref<1x1x8x8xbf16, #tpu.memory_space<vmem>>, %arg4: memref<1x1x8x8xbf16, #tpu.memory_space<vmem>>, %arg5: memref<8x4xbf16, #tpu.memory_space<vmem>>, %arg6: memref<1x4xf32, #tpu.memory_space<vmem>>, %arg7: memref<1x4x16x4xbf16, #tpu.memory_space<vmem>>) attributes {dimension_semantics = [#tpu.dimension_semantics<parallel>, #tpu.dimension_semantics<parallel>], iteration_bounds = array<i64: 2, 4>, scalar_prefetch = 0 : i64, scratch_operands = 0 : i64, tpu.core_type = #tpu.core_type<tc>, window_params = [{transform_indices = @transform_0, window_bounds = array<i64: 1, 2, 8, 8>}, {transform_indices = @transform_1, window_bounds = array<i64: 1, 1, 8, 8>}, {transform_indices = @transform_2, window_bounds = array<i64: 1, 1, 8, 8>}, {pipeline_mode = #tpu.pipeline_mode<synchronous>, transform_indices = @transform_3, window_bounds = array<i64: 8, 4>}, {pipeline_mode = #tpu.pipeline_mode<synchronous>, transform_indices = @transform_4, window_bounds = array<i64: 1, 4>}, {transform_indices = @transform_5, window_bounds = array<i64: 1, 4, 16, 4>}]} {
    %c0 = arith.constant 0 : index
    %c0_0 = arith.constant 0 : index
    %c0_1 = arith.constant 0 : index
    %c0_2 = arith.constant 0 : index
    %0 = vector.load %arg3[%c0, %c0_0, %c0_1, %c0_2] : memref<1x1x8x8xbf16, #tpu.memory_space<vmem>>, vector<1x1x8x8xbf16>
    %1 = vector.shape_cast %0 : vector<1x1x8x8xbf16> to vector<1x8x8xbf16>
    %c0_3 = arith.constant 0 : index
    %c0_4 = arith.constant 0 : index
    %c0_5 = arith.constant 0 : index
    %c0_6 = arith.constant 0 : index
    %2 = vector.load %arg2[%c0_3, %c0_4, %c0_5, %c0_6] : memref<1x2x8x8xbf16, #tpu.memory_space<vmem>>, vector<1x2x8x8xbf16>
    %3 = vector.shape_cast %2 : vector<1x2x8x8xbf16> to vector<2x8x8xbf16>
    %c0_7 = arith.constant 0 : index
    %c0_8 = arith.constant 0 : index
    %c0_9 = arith.constant 0 : index
    %c0_10 = arith.constant 0 : index
    %4 = vector.load %arg4[%c0_7, %c0_8, %c0_9, %c0_10] : memref<1x1x8x8xbf16, #tpu.memory_space<vmem>>, vector<1x1x8x8xbf16>
    %5 = vector.shape_cast %4 : vector<1x1x8x8xbf16> to vector<1x8x8xbf16>
    %6 = tpu.concatenate %1, %3, %5 in 0 : vector<1x8x8xbf16>, vector<2x8x8xbf16>, vector<1x8x8xbf16> -> vector<4x8x8xbf16>
    %7 = vector.shape_cast %6 : vector<4x8x8xbf16> to vector<32x8xbf16>
    %c0_11 = arith.constant 0 : index
    %c0_12 = arith.constant 0 : index
    %8 = vector.load %arg5[%c0_11, %c0_12] : memref<8x4xbf16, #tpu.memory_space<vmem>>, vector<8x4xbf16>
    %cst = arith.constant dense<0.000000e+00> : vector<32x4xf32>
    %9 = tpu.matmul %7, %8, %cst {dimension_numbers = #tpu.dot_dimension_numbers<[1], [0], [0], [1], [0, 0, 1, 1], [], []>} : vector<32x8xbf16>, vector<8x4xbf16>, vector<32x4xf32> -> vector<32x4xf32>
    %10 = vector.shape_cast %9 : vector<32x4xf32> to vector<4x8x4xf32>
    %11 = vector.extract_strided_slice %10 {offsets = [0, 0, 0], sizes = [2, 8, 4], strides = [1, 1, 1]} : vector<4x8x4xf32> to vector<2x8x4xf32>
    %12 = vector.extract_strided_slice %10 {offsets = [1, 0, 0], sizes = [2, 8, 4], strides = [1, 1, 1]} : vector<4x8x4xf32> to vector<2x8x4xf32>
    %13 = vector.extract_strided_slice %10 {offsets = [2, 0, 0], sizes = [2, 8, 4], strides = [1, 1, 1]} : vector<4x8x4xf32> to vector<2x8x4xf32>
    %cst_13 = arith.constant 7.500000e-01 : f32
    %14 = vector.broadcast %cst_13 : f32 to vector<2x8x4xf32>
    %15 = arith.mulf %14, %12 : vector<2x8x4xf32>
    %cst_14 = arith.constant 2.500000e-01 : f32
    %16 = vector.broadcast %cst_14 : f32 to vector<2x8x4xf32>
    %17 = arith.mulf %16, %11 : vector<2x8x4xf32>
    %18 = arith.addf %15, %17 : vector<2x8x4xf32>
    %cst_15 = arith.constant 7.500000e-01 : f32
    %19 = vector.broadcast %cst_15 : f32 to vector<2x8x4xf32>
    %20 = arith.mulf %19, %12 : vector<2x8x4xf32>
    %cst_16 = arith.constant 2.500000e-01 : f32
    %21 = vector.broadcast %cst_16 : f32 to vector<2x8x4xf32>
    %22 = arith.mulf %21, %13 : vector<2x8x4xf32>
    %23 = arith.addf %20, %22 : vector<2x8x4xf32>
    %24 = vector.shape_cast %18 : vector<2x8x4xf32> to vector<2x1x8x4xf32>
    %25 = vector.shape_cast %23 : vector<2x8x4xf32> to vector<2x1x8x4xf32>
    %26 = tpu.concatenate %24, %25 in 1 : vector<2x1x8x4xf32>, vector<2x1x8x4xf32> -> vector<2x2x8x4xf32>
    %27 = vector.shape_cast %26 : vector<2x2x8x4xf32> to vector<4x8x4xf32>
    %28 = vector.extract_strided_slice %27 {offsets = [0, 0, 0], sizes = [4, 1, 4], strides = [1, 1, 1]} : vector<4x8x4xf32> to vector<4x1x4xf32>
    %29 = vector.extract_strided_slice %27 {offsets = [0, 0, 0], sizes = [4, 7, 4], strides = [1, 1, 1]} : vector<4x8x4xf32> to vector<4x7x4xf32>
    %30 = tpu.concatenate %28, %29 in 1 : vector<4x1x4xf32>, vector<4x7x4xf32> -> vector<4x8x4xf32>
    %31 = vector.extract_strided_slice %27 {offsets = [0, 1, 0], sizes = [4, 7, 4], strides = [1, 1, 1]} : vector<4x8x4xf32> to vector<4x7x4xf32>
    %32 = vector.extract_strided_slice %27 {offsets = [0, 7, 0], sizes = [4, 1, 4], strides = [1, 1, 1]} : vector<4x8x4xf32> to vector<4x1x4xf32>
    %33 = tpu.concatenate %31, %32 in 1 : vector<4x7x4xf32>, vector<4x1x4xf32> -> vector<4x8x4xf32>
    %cst_17 = arith.constant 7.500000e-01 : f32
    %34 = vector.broadcast %cst_17 : f32 to vector<4x8x4xf32>
    %35 = arith.mulf %34, %27 : vector<4x8x4xf32>
    %cst_18 = arith.constant 2.500000e-01 : f32
    %36 = vector.broadcast %cst_18 : f32 to vector<4x8x4xf32>
    %37 = arith.mulf %36, %30 : vector<4x8x4xf32>
    %38 = arith.addf %35, %37 : vector<4x8x4xf32>
    %cst_19 = arith.constant 7.500000e-01 : f32
    %39 = vector.broadcast %cst_19 : f32 to vector<4x8x4xf32>
    %40 = arith.mulf %39, %27 : vector<4x8x4xf32>
    %cst_20 = arith.constant 2.500000e-01 : f32
    %41 = vector.broadcast %cst_20 : f32 to vector<4x8x4xf32>
    %42 = arith.mulf %41, %33 : vector<4x8x4xf32>
    %43 = arith.addf %40, %42 : vector<4x8x4xf32>
    %44 = vector.shape_cast %38 : vector<4x8x4xf32> to vector<4x8x1x4xf32>
    %45 = vector.shape_cast %43 : vector<4x8x4xf32> to vector<4x8x1x4xf32>
    %46 = tpu.concatenate %44, %45 in 2 : vector<4x8x1x4xf32>, vector<4x8x1x4xf32> -> vector<4x8x2x4xf32>
    %47 = vector.shape_cast %46 : vector<4x8x2x4xf32> to vector<4x16x4xf32>
    %c0_21 = arith.constant 0 : index
    %c0_22 = arith.constant 0 : index
    %48 = vector.load %arg6[%c0_21, %c0_22] : memref<1x4xf32, #tpu.memory_space<vmem>>, vector<1x4xf32>
    %49 = vector.shape_cast %48 : vector<1x4xf32> to vector<1x1x4xf32>
    %50 = vector.broadcast %49 : vector<1x1x4xf32> to vector<4x16x4xf32>
    %51 = arith.addf %47, %50 : vector<4x16x4xf32>
    %cst_23 = arith.constant 0.000000e+00 : f32
    %52 = vector.broadcast %cst_23 : f32 to vector<4x16x4xf32>
    %53 = arith.maximumf %51, %52 : vector<4x16x4xf32>
    %54 = vector.shape_cast %53 : vector<4x16x4xf32> to vector<1x4x16x4xf32>
    %55 = arith.truncf %54 : vector<1x4x16x4xf32> to vector<1x4x16x4xbf16>
    %c0_24 = arith.constant 0 : index
    %c0_25 = arith.constant 0 : index
    %c0_26 = arith.constant 0 : index
    %c0_27 = arith.constant 0 : index
    %56 = vector.load %arg7[%c0_24, %c0_25, %c0_26, %c0_27] : memref<1x4x16x4xbf16, #tpu.memory_space<vmem>>, vector<1x4x16x4xbf16>
    tpu.vector_store %arg7[%c0_24, %c0_25, %c0_26, %c0_27], %55 {strides = array<i32>} : memref<1x4x16x4xbf16, #tpu.memory_space<vmem>>, vector<1x4x16x4xbf16>,
    return
  }
  func.func @transform_0(%arg0: i32, %arg1: i32) -> (i32, i32, i32, i32) {
    %c0_i32 = arith.constant 0 : i32
    %c0_i32_0 = arith.constant 0 : i32
    %c0_i32_1 = arith.constant 0 : i32
    return %arg0, %arg1, %c0_i32, %c0_i32_0 : i32, i32, i32, i32
  }
  func.func @transform_1(%arg0: i32, %arg1: i32) -> (i32, i32, i32, i32) {
    %c2_i32 = arith.constant 2 : i32
    %0 = arith.muli %arg1, %c2_i32 : i32
    %c1_i32 = arith.constant 1 : i32
    %1 = arith.subi %0, %c1_i32 : i32
    %c0_i32 = arith.constant 0 : i32
    %2 = arith.maxsi %1, %c0_i32 : i32
    %c0_i32_0 = arith.constant 0 : i32
    %c0_i32_1 = arith.constant 0 : i32
    %c0_i32_2 = arith.constant 0 : i32
    return %arg0, %2, %c0_i32_0, %c0_i32_1 : i32, i32, i32, i32
  }
  func.func @transform_2(%arg0: i32, %arg1: i32) -> (i32, i32, i32, i32) {
    %c1_i32 = arith.constant 1 : i32
    %0 = arith.addi %arg1, %c1_i32 : i32
    %c2_i32 = arith.constant 2 : i32
    %1 = arith.muli %0, %c2_i32 : i32
    %c7_i32 = arith.constant 7 : i32
    %2 = arith.minsi %1, %c7_i32 : i32
    %c0_i32 = arith.constant 0 : i32
    %c0_i32_0 = arith.constant 0 : i32
    %c0_i32_1 = arith.constant 0 : i32
    return %arg0, %2, %c0_i32, %c0_i32_0 : i32, i32, i32, i32
  }
  func.func @transform_3(%arg0: i32, %arg1: i32) -> (i32, i32) {
    %c0_i32 = arith.constant 0 : i32
    %c0_i32_0 = arith.constant 0 : i32
    %c0_i32_1 = arith.constant 0 : i32
    return %c0_i32, %c0_i32_0 : i32, i32
  }
  func.func @transform_4(%arg0: i32, %arg1: i32) -> (i32, i32) {
    %c0_i32 = arith.constant 0 : i32
    %c0_i32_0 = arith.constant 0 : i32
    %c0_i32_1 = arith.constant 0 : i32
    return %c0_i32, %c0_i32_0 : i32, i32
  }
  func.func @transform_5(%arg0: i32, %arg1: i32) -> (i32, i32, i32, i32) {
    %c0_i32 = arith.constant 0 : i32
    %c0_i32_0 = arith.constant 0 : i32
    %c0_i32_1 = arith.constant 0 : i32
    return %arg0, %arg1, %c0_i32, %c0_i32_0 : i32, i32, i32, i32
  }
}

module attributes {stable_mosaic.version = 11 : i64} {
  func.func @_conv3x3_kernel(%arg0: i32, %arg1: i32, %arg2: memref<1x4x16x4xbf16, #tpu.memory_space<vmem>>, %arg3: memref<1x1x16x4xbf16, #tpu.memory_space<vmem>>, %arg4: memref<1x1x16x4xbf16, #tpu.memory_space<vmem>>, %arg5: memref<1x4x16x4xbf16, #tpu.memory_space<vmem>>, %arg6: memref<1x1x16x4xbf16, #tpu.memory_space<vmem>>, %arg7: memref<1x1x16x4xbf16, #tpu.memory_space<vmem>>, %arg8: memref<3x12x4xbf16, #tpu.memory_space<vmem>>, %arg9: memref<3x12x4xbf16, #tpu.memory_space<vmem>>, %arg10: memref<1x4xf32, #tpu.memory_space<vmem>>, %arg11: memref<1x4x16x4xbf16, #tpu.memory_space<vmem>>) attributes {dimension_semantics = [#tpu.dimension_semantics<parallel>, #tpu.dimension_semantics<parallel>], iteration_bounds = array<i64: 2, 4>, scalar_prefetch = 0 : i64, scratch_operands = 0 : i64, tpu.core_type = #tpu.core_type<tc>, window_params = [{transform_indices = @transform_0, window_bounds = array<i64: 1, 4, 16, 4>}, {transform_indices = @transform_1, window_bounds = array<i64: 1, 1, 16, 4>}, {transform_indices = @transform_2, window_bounds = array<i64: 1, 1, 16, 4>}, {transform_indices = @transform_3, window_bounds = array<i64: 1, 4, 16, 4>}, {transform_indices = @transform_4, window_bounds = array<i64: 1, 1, 16, 4>}, {transform_indices = @transform_5, window_bounds = array<i64: 1, 1, 16, 4>}, {pipeline_mode = #tpu.pipeline_mode<synchronous>, transform_indices = @transform_6, window_bounds = array<i64: 3, 12, 4>}, {pipeline_mode = #tpu.pipeline_mode<synchronous>, transform_indices = @transform_7, window_bounds = array<i64: 3, 12, 4>}, {pipeline_mode = #tpu.pipeline_mode<synchronous>, transform_indices = @transform_8, window_bounds = array<i64: 1, 4>}, {transform_indices = @transform_9, window_bounds = array<i64: 1, 4, 16, 4>}]} {
    %c0 = arith.constant 0 : index
    %c0_0 = arith.constant 0 : index
    %c0_1 = arith.constant 0 : index
    %c0_2 = arith.constant 0 : index
    %0 = vector.load %arg2[%c0, %c0_0, %c0_1, %c0_2] : memref<1x4x16x4xbf16, #tpu.memory_space<vmem>>, vector<1x4x16x4xbf16>
    %1 = vector.shape_cast %0 : vector<1x4x16x4xbf16> to vector<4x16x4xbf16>
    %c0_i32 = arith.constant 0 : i32
    %2 = arith.cmpi eq, %arg1, %c0_i32 : i32
    %cst = arith.constant 0.000000e+00 : bf16
    %3 = vector.broadcast %cst : bf16 to vector<1x16x4xbf16>
    %c0_3 = arith.constant 0 : index
    %c0_4 = arith.constant 0 : index
    %c0_5 = arith.constant 0 : index
    %c0_6 = arith.constant 0 : index
    %4 = vector.load %arg3[%c0_3, %c0_4, %c0_5, %c0_6] : memref<1x1x16x4xbf16, #tpu.memory_space<vmem>>, vector<1x1x16x4xbf16>
    %5 = vector.shape_cast %4 : vector<1x1x16x4xbf16> to vector<1x16x4xbf16>
    %6 = arith.select %2, %3, %5 : vector<1x16x4xbf16>
    %c3_i32 = arith.constant 3 : i32
    %7 = arith.cmpi eq, %arg1, %c3_i32 : i32
    %cst_7 = arith.constant 0.000000e+00 : bf16
    %8 = vector.broadcast %cst_7 : bf16 to vector<1x16x4xbf16>
    %c0_8 = arith.constant 0 : index
    %c0_9 = arith.constant 0 : index
    %c0_10 = arith.constant 0 : index
    %c0_11 = arith.constant 0 : index
    %9 = vector.load %arg4[%c0_8, %c0_9, %c0_10, %c0_11] : memref<1x1x16x4xbf16, #tpu.memory_space<vmem>>, vector<1x1x16x4xbf16>
    %10 = vector.shape_cast %9 : vector<1x1x16x4xbf16> to vector<1x16x4xbf16>
    %11 = arith.select %7, %8, %10 : vector<1x16x4xbf16>
    %12 = tpu.concatenate %6, %1, %11 in 0 : vector<1x16x4xbf16>, vector<4x16x4xbf16>, vector<1x16x4xbf16> -> vector<6x16x4xbf16>
    %cst_12 = arith.constant 0.000000e+00 : bf16
    %13 = vector.broadcast %cst_12 : bf16 to vector<6x1x4xbf16>
    %14 = vector.extract_strided_slice %12 {offsets = [0, 0, 0], sizes = [6, 15, 4], strides = [1, 1, 1]} : vector<6x16x4xbf16> to vector<6x15x4xbf16>
    %15 = tpu.concatenate %13, %14 in 1 : vector<6x1x4xbf16>, vector<6x15x4xbf16> -> vector<6x16x4xbf16>
    %16 = vector.extract_strided_slice %12 {offsets = [0, 1, 0], sizes = [6, 15, 4], strides = [1, 1, 1]} : vector<6x16x4xbf16> to vector<6x15x4xbf16>
    %17 = tpu.concatenate %16, %13 in 1 : vector<6x15x4xbf16>, vector<6x1x4xbf16> -> vector<6x16x4xbf16>
    %18 = tpu.concatenate %15, %12, %17 in 2 : vector<6x16x4xbf16>, vector<6x16x4xbf16>, vector<6x16x4xbf16> -> vector<6x16x12xbf16>
    %19 = vector.extract_strided_slice %18 {offsets = [0, 0, 0], sizes = [4, 16, 12], strides = [1, 1, 1]} : vector<6x16x12xbf16> to vector<4x16x12xbf16>
    %20 = vector.shape_cast %19 : vector<4x16x12xbf16> to vector<64x12xbf16>
    %c0_13 = arith.constant 0 : index
    %c0_14 = arith.constant 0 : index
    %c0_15 = arith.constant 0 : index
    %21 = vector.load %arg8[%c0_13, %c0_14, %c0_15] : memref<3x12x4xbf16, #tpu.memory_space<vmem>>, vector<1x12x4xbf16>
    %22 = vector.shape_cast %21 : vector<1x12x4xbf16> to vector<12x4xbf16>
    %cst_16 = arith.constant dense<0.000000e+00> : vector<64x4xf32>
    %23 = tpu.matmul %20, %22, %cst_16 {dimension_numbers = #tpu.dot_dimension_numbers<[1], [0], [0], [1], [0, 0, 1, 1], [], []>} : vector<64x12xbf16>, vector<12x4xbf16>, vector<64x4xf32> -> vector<64x4xf32>
    %24 = vector.extract_strided_slice %18 {offsets = [1, 0, 0], sizes = [4, 16, 12], strides = [1, 1, 1]} : vector<6x16x12xbf16> to vector<4x16x12xbf16>
    %25 = vector.shape_cast %24 : vector<4x16x12xbf16> to vector<64x12xbf16>
    %c1 = arith.constant 1 : index
    %c0_17 = arith.constant 0 : index
    %c0_18 = arith.constant 0 : index
    %26 = vector.load %arg8[%c1, %c0_17, %c0_18] : memref<3x12x4xbf16, #tpu.memory_space<vmem>>, vector<1x12x4xbf16>
    %27 = vector.shape_cast %26 : vector<1x12x4xbf16> to vector<12x4xbf16>
    %cst_19 = arith.constant dense<0.000000e+00> : vector<64x4xf32>
    %28 = tpu.matmul %25, %27, %cst_19 {dimension_numbers = #tpu.dot_dimension_numbers<[1], [0], [0], [1], [0, 0, 1, 1], [], []>} : vector<64x12xbf16>, vector<12x4xbf16>, vector<64x4xf32> -> vector<64x4xf32>
    %29 = arith.addf %23, %28 : vector<64x4xf32>
    %30 = vector.extract_strided_slice %18 {offsets = [2, 0, 0], sizes = [4, 16, 12], strides = [1, 1, 1]} : vector<6x16x12xbf16> to vector<4x16x12xbf16>
    %31 = vector.shape_cast %30 : vector<4x16x12xbf16> to vector<64x12xbf16>
    %c2 = arith.constant 2 : index
    %c0_20 = arith.constant 0 : index
    %c0_21 = arith.constant 0 : index
    %32 = vector.load %arg8[%c2, %c0_20, %c0_21] : memref<3x12x4xbf16, #tpu.memory_space<vmem>>, vector<1x12x4xbf16>
    %33 = vector.shape_cast %32 : vector<1x12x4xbf16> to vector<12x4xbf16>
    %cst_22 = arith.constant dense<0.000000e+00> : vector<64x4xf32>
    %34 = tpu.matmul %31, %33, %cst_22 {dimension_numbers = #tpu.dot_dimension_numbers<[1], [0], [0], [1], [0, 0, 1, 1], [], []>} : vector<64x12xbf16>, vector<12x4xbf16>, vector<64x4xf32> -> vector<64x4xf32>
    %35 = arith.addf %29, %34 : vector<64x4xf32>
    %c0_23 = arith.constant 0 : index
    %c0_24 = arith.constant 0 : index
    %c0_25 = arith.constant 0 : index
    %c0_26 = arith.constant 0 : index
    %36 = vector.load %arg5[%c0_23, %c0_24, %c0_25, %c0_26] : memref<1x4x16x4xbf16, #tpu.memory_space<vmem>>, vector<1x4x16x4xbf16>
    %37 = vector.shape_cast %36 : vector<1x4x16x4xbf16> to vector<4x16x4xbf16>
    %c0_i32_27 = arith.constant 0 : i32
    %38 = arith.cmpi eq, %arg1, %c0_i32_27 : i32
    %cst_28 = arith.constant 0.000000e+00 : bf16
    %39 = vector.broadcast %cst_28 : bf16 to vector<1x16x4xbf16>
    %c0_29 = arith.constant 0 : index
    %c0_30 = arith.constant 0 : index
    %c0_31 = arith.constant 0 : index
    %c0_32 = arith.constant 0 : index
    %40 = vector.load %arg6[%c0_29, %c0_30, %c0_31, %c0_32] : memref<1x1x16x4xbf16, #tpu.memory_space<vmem>>, vector<1x1x16x4xbf16>
    %41 = vector.shape_cast %40 : vector<1x1x16x4xbf16> to vector<1x16x4xbf16>
    %42 = arith.select %38, %39, %41 : vector<1x16x4xbf16>
    %c3_i32_33 = arith.constant 3 : i32
    %43 = arith.cmpi eq, %arg1, %c3_i32_33 : i32
    %cst_34 = arith.constant 0.000000e+00 : bf16
    %44 = vector.broadcast %cst_34 : bf16 to vector<1x16x4xbf16>
    %c0_35 = arith.constant 0 : index
    %c0_36 = arith.constant 0 : index
    %c0_37 = arith.constant 0 : index
    %c0_38 = arith.constant 0 : index
    %45 = vector.load %arg7[%c0_35, %c0_36, %c0_37, %c0_38] : memref<1x1x16x4xbf16, #tpu.memory_space<vmem>>, vector<1x1x16x4xbf16>
    %46 = vector.shape_cast %45 : vector<1x1x16x4xbf16> to vector<1x16x4xbf16>
    %47 = arith.select %43, %44, %46 : vector<1x16x4xbf16>
    %48 = tpu.concatenate %42, %37, %47 in 0 : vector<1x16x4xbf16>, vector<4x16x4xbf16>, vector<1x16x4xbf16> -> vector<6x16x4xbf16>
    %cst_39 = arith.constant 0.000000e+00 : bf16
    %49 = vector.broadcast %cst_39 : bf16 to vector<6x1x4xbf16>
    %50 = vector.extract_strided_slice %48 {offsets = [0, 0, 0], sizes = [6, 15, 4], strides = [1, 1, 1]} : vector<6x16x4xbf16> to vector<6x15x4xbf16>
    %51 = tpu.concatenate %49, %50 in 1 : vector<6x1x4xbf16>, vector<6x15x4xbf16> -> vector<6x16x4xbf16>
    %52 = vector.extract_strided_slice %48 {offsets = [0, 1, 0], sizes = [6, 15, 4], strides = [1, 1, 1]} : vector<6x16x4xbf16> to vector<6x15x4xbf16>
    %53 = tpu.concatenate %52, %49 in 1 : vector<6x15x4xbf16>, vector<6x1x4xbf16> -> vector<6x16x4xbf16>
    %54 = tpu.concatenate %51, %48, %53 in 2 : vector<6x16x4xbf16>, vector<6x16x4xbf16>, vector<6x16x4xbf16> -> vector<6x16x12xbf16>
    %55 = vector.extract_strided_slice %54 {offsets = [0, 0, 0], sizes = [4, 16, 12], strides = [1, 1, 1]} : vector<6x16x12xbf16> to vector<4x16x12xbf16>
    %56 = vector.shape_cast %55 : vector<4x16x12xbf16> to vector<64x12xbf16>
    %c0_40 = arith.constant 0 : index
    %c0_41 = arith.constant 0 : index
    %c0_42 = arith.constant 0 : index
    %57 = vector.load %arg9[%c0_40, %c0_41, %c0_42] : memref<3x12x4xbf16, #tpu.memory_space<vmem>>, vector<1x12x4xbf16>
    %58 = vector.shape_cast %57 : vector<1x12x4xbf16> to vector<12x4xbf16>
    %cst_43 = arith.constant dense<0.000000e+00> : vector<64x4xf32>
    %59 = tpu.matmul %56, %58, %cst_43 {dimension_numbers = #tpu.dot_dimension_numbers<[1], [0], [0], [1], [0, 0, 1, 1], [], []>} : vector<64x12xbf16>, vector<12x4xbf16>, vector<64x4xf32> -> vector<64x4xf32>
    %60 = arith.addf %35, %59 : vector<64x4xf32>
    %61 = vector.extract_strided_slice %54 {offsets = [1, 0, 0], sizes = [4, 16, 12], strides = [1, 1, 1]} : vector<6x16x12xbf16> to vector<4x16x12xbf16>
    %62 = vector.shape_cast %61 : vector<4x16x12xbf16> to vector<64x12xbf16>
    %c1_44 = arith.constant 1 : index
    %c0_45 = arith.constant 0 : index
    %c0_46 = arith.constant 0 : index
    %63 = vector.load %arg9[%c1_44, %c0_45, %c0_46] : memref<3x12x4xbf16, #tpu.memory_space<vmem>>, vector<1x12x4xbf16>
    %64 = vector.shape_cast %63 : vector<1x12x4xbf16> to vector<12x4xbf16>
    %cst_47 = arith.constant dense<0.000000e+00> : vector<64x4xf32>
    %65 = tpu.matmul %62, %64, %cst_47 {dimension_numbers = #tpu.dot_dimension_numbers<[1], [0], [0], [1], [0, 0, 1, 1], [], []>} : vector<64x12xbf16>, vector<12x4xbf16>, vector<64x4xf32> -> vector<64x4xf32>
    %66 = arith.addf %60, %65 : vector<64x4xf32>
    %67 = vector.extract_strided_slice %54 {offsets = [2, 0, 0], sizes = [4, 16, 12], strides = [1, 1, 1]} : vector<6x16x12xbf16> to vector<4x16x12xbf16>
    %68 = vector.shape_cast %67 : vector<4x16x12xbf16> to vector<64x12xbf16>
    %c2_48 = arith.constant 2 : index
    %c0_49 = arith.constant 0 : index
    %c0_50 = arith.constant 0 : index
    %69 = vector.load %arg9[%c2_48, %c0_49, %c0_50] : memref<3x12x4xbf16, #tpu.memory_space<vmem>>, vector<1x12x4xbf16>
    %70 = vector.shape_cast %69 : vector<1x12x4xbf16> to vector<12x4xbf16>
    %cst_51 = arith.constant dense<0.000000e+00> : vector<64x4xf32>
    %71 = tpu.matmul %68, %70, %cst_51 {dimension_numbers = #tpu.dot_dimension_numbers<[1], [0], [0], [1], [0, 0, 1, 1], [], []>} : vector<64x12xbf16>, vector<12x4xbf16>, vector<64x4xf32> -> vector<64x4xf32>
    %72 = arith.addf %66, %71 : vector<64x4xf32>
    %c0_52 = arith.constant 0 : index
    %c0_53 = arith.constant 0 : index
    %73 = vector.load %arg10[%c0_52, %c0_53] : memref<1x4xf32, #tpu.memory_space<vmem>>, vector<1x4xf32>
    %74 = vector.broadcast %73 : vector<1x4xf32> to vector<64x4xf32>
    %75 = arith.addf %72, %74 : vector<64x4xf32>
    %cst_54 = arith.constant 0.000000e+00 : f32
    %76 = vector.broadcast %cst_54 : f32 to vector<64x4xf32>
    %77 = arith.maximumf %75, %76 : vector<64x4xf32>
    %78 = vector.shape_cast %77 : vector<64x4xf32> to vector<1x4x16x4xf32>
    %79 = arith.truncf %78 : vector<1x4x16x4xf32> to vector<1x4x16x4xbf16>
    %c0_55 = arith.constant 0 : index
    %c0_56 = arith.constant 0 : index
    %c0_57 = arith.constant 0 : index
    %c0_58 = arith.constant 0 : index
    %80 = vector.load %arg11[%c0_55, %c0_56, %c0_57, %c0_58] : memref<1x4x16x4xbf16, #tpu.memory_space<vmem>>, vector<1x4x16x4xbf16>
    tpu.vector_store %arg11[%c0_55, %c0_56, %c0_57, %c0_58], %79 {strides = array<i32>} : memref<1x4x16x4xbf16, #tpu.memory_space<vmem>>, vector<1x4x16x4xbf16>,
    return
  }
  func.func @transform_0(%arg0: i32, %arg1: i32) -> (i32, i32, i32, i32) {
    %c0_i32 = arith.constant 0 : i32
    %c0_i32_0 = arith.constant 0 : i32
    %c0_i32_1 = arith.constant 0 : i32
    return %arg0, %arg1, %c0_i32, %c0_i32_0 : i32, i32, i32, i32
  }
  func.func @transform_1(%arg0: i32, %arg1: i32) -> (i32, i32, i32, i32) {
    %c4_i32 = arith.constant 4 : i32
    %0 = arith.muli %arg1, %c4_i32 : i32
    %c1_i32 = arith.constant 1 : i32
    %1 = arith.subi %0, %c1_i32 : i32
    %c0_i32 = arith.constant 0 : i32
    %2 = arith.maxsi %1, %c0_i32 : i32
    %c0_i32_0 = arith.constant 0 : i32
    %c0_i32_1 = arith.constant 0 : i32
    %c0_i32_2 = arith.constant 0 : i32
    return %arg0, %2, %c0_i32_0, %c0_i32_1 : i32, i32, i32, i32
  }
  func.func @transform_2(%arg0: i32, %arg1: i32) -> (i32, i32, i32, i32) {
    %c1_i32 = arith.constant 1 : i32
    %0 = arith.addi %arg1, %c1_i32 : i32
    %c4_i32 = arith.constant 4 : i32
    %1 = arith.muli %0, %c4_i32 : i32
    %c15_i32 = arith.constant 15 : i32
    %2 = arith.minsi %1, %c15_i32 : i32
    %c0_i32 = arith.constant 0 : i32
    %c0_i32_0 = arith.constant 0 : i32
    %c0_i32_1 = arith.constant 0 : i32
    return %arg0, %2, %c0_i32, %c0_i32_0 : i32, i32, i32, i32
  }
  func.func @transform_3(%arg0: i32, %arg1: i32) -> (i32, i32, i32, i32) {
    %c0_i32 = arith.constant 0 : i32
    %c0_i32_0 = arith.constant 0 : i32
    %c0_i32_1 = arith.constant 0 : i32
    return %arg0, %arg1, %c0_i32, %c0_i32_0 : i32, i32, i32, i32
  }
  func.func @transform_4(%arg0: i32, %arg1: i32) -> (i32, i32, i32, i32) {
    %c4_i32 = arith.constant 4 : i32
    %0 = arith.muli %arg1, %c4_i32 : i32
    %c1_i32 = arith.constant 1 : i32
    %1 = arith.subi %0, %c1_i32 : i32
    %c0_i32 = arith.constant 0 : i32
    %2 = arith.maxsi %1, %c0_i32 : i32
    %c0_i32_0 = arith.constant 0 : i32
    %c0_i32_1 = arith.constant 0 : i32
    %c0_i32_2 = arith.constant 0 : i32
    return %arg0, %2, %c0_i32_0, %c0_i32_1 : i32, i32, i32, i32
  }
  func.func @transform_5(%arg0: i32, %arg1: i32) -> (i32, i32, i32, i32) {
    %c1_i32 = arith.constant 1 : i32
    %0 = arith.addi %arg1, %c1_i32 : i32
    %c4_i32 = arith.constant 4 : i32
    %1 = arith.muli %0, %c4_i32 : i32
    %c15_i32 = arith.constant 15 : i32
    %2 = arith.minsi %1, %c15_i32 : i32
    %c0_i32 = arith.constant 0 : i32
    %c0_i32_0 = arith.constant 0 : i32
    %c0_i32_1 = arith.constant 0 : i32
    return %arg0, %2, %c0_i32, %c0_i32_0 : i32, i32, i32, i32
  }
  func.func @transform_6(%arg0: i32, %arg1: i32) -> (i32, i32, i32) {
    %c0_i32 = arith.constant 0 : i32
    %c0_i32_0 = arith.constant 0 : i32
    %c0_i32_1 = arith.constant 0 : i32
    %c0_i32_2 = arith.constant 0 : i32
    return %c0_i32, %c0_i32_0, %c0_i32_1 : i32, i32, i32
  }
  func.func @transform_7(%arg0: i32, %arg1: i32) -> (i32, i32, i32) {
    %c0_i32 = arith.constant 0 : i32
    %c0_i32_0 = arith.constant 0 : i32
    %c0_i32_1 = arith.constant 0 : i32
    %c0_i32_2 = arith.constant 0 : i32
    return %c0_i32, %c0_i32_0, %c0_i32_1 : i32, i32, i32
  }
  func.func @transform_8(%arg0: i32, %arg1: i32) -> (i32, i32) {
    %c0_i32 = arith.constant 0 : i32
    %c0_i32_0 = arith.constant 0 : i32
    %c0_i32_1 = arith.constant 0 : i32
    return %c0_i32, %c0_i32_0 : i32, i32
  }
  func.func @transform_9(%arg0: i32, %arg1: i32) -> (i32, i32, i32, i32) {
    %c0_i32 = arith.constant 0 : i32
    %c0_i32_0 = arith.constant 0 : i32
    %c0_i32_1 = arith.constant 0 : i32
    return %arg0, %arg1, %c0_i32, %c0_i32_0 : i32, i32, i32, i32
  }
}

module attributes {stable_mosaic.version = 11 : i64} {
  func.func @_conv3x3_kernel(%arg0: i32, %arg1: i32, %arg2: memref<1x4x16x4xbf16, #tpu.memory_space<vmem>>, %arg3: memref<1x1x16x4xbf16, #tpu.memory_space<vmem>>, %arg4: memref<1x1x16x4xbf16, #tpu.memory_space<vmem>>, %arg5: memref<3x12x4xbf16, #tpu.memory_space<vmem>>, %arg6: memref<1x4xf32, #tpu.memory_space<vmem>>, %arg7: memref<1x4x16x4xf32, #tpu.memory_space<vmem>>) attributes {dimension_semantics = [#tpu.dimension_semantics<parallel>, #tpu.dimension_semantics<parallel>], iteration_bounds = array<i64: 2, 4>, scalar_prefetch = 0 : i64, scratch_operands = 0 : i64, tpu.core_type = #tpu.core_type<tc>, window_params = [{transform_indices = @transform_0, window_bounds = array<i64: 1, 4, 16, 4>}, {transform_indices = @transform_1, window_bounds = array<i64: 1, 1, 16, 4>}, {transform_indices = @transform_2, window_bounds = array<i64: 1, 1, 16, 4>}, {pipeline_mode = #tpu.pipeline_mode<synchronous>, transform_indices = @transform_3, window_bounds = array<i64: 3, 12, 4>}, {pipeline_mode = #tpu.pipeline_mode<synchronous>, transform_indices = @transform_4, window_bounds = array<i64: 1, 4>}, {transform_indices = @transform_5, window_bounds = array<i64: 1, 4, 16, 4>}]} {
    %c0 = arith.constant 0 : index
    %c0_0 = arith.constant 0 : index
    %c0_1 = arith.constant 0 : index
    %c0_2 = arith.constant 0 : index
    %0 = vector.load %arg2[%c0, %c0_0, %c0_1, %c0_2] : memref<1x4x16x4xbf16, #tpu.memory_space<vmem>>, vector<1x4x16x4xbf16>
    %1 = vector.shape_cast %0 : vector<1x4x16x4xbf16> to vector<4x16x4xbf16>
    %c0_i32 = arith.constant 0 : i32
    %2 = arith.cmpi eq, %arg1, %c0_i32 : i32
    %cst = arith.constant 0.000000e+00 : bf16
    %3 = vector.broadcast %cst : bf16 to vector<1x16x4xbf16>
    %c0_3 = arith.constant 0 : index
    %c0_4 = arith.constant 0 : index
    %c0_5 = arith.constant 0 : index
    %c0_6 = arith.constant 0 : index
    %4 = vector.load %arg3[%c0_3, %c0_4, %c0_5, %c0_6] : memref<1x1x16x4xbf16, #tpu.memory_space<vmem>>, vector<1x1x16x4xbf16>
    %5 = vector.shape_cast %4 : vector<1x1x16x4xbf16> to vector<1x16x4xbf16>
    %6 = arith.select %2, %3, %5 : vector<1x16x4xbf16>
    %c3_i32 = arith.constant 3 : i32
    %7 = arith.cmpi eq, %arg1, %c3_i32 : i32
    %cst_7 = arith.constant 0.000000e+00 : bf16
    %8 = vector.broadcast %cst_7 : bf16 to vector<1x16x4xbf16>
    %c0_8 = arith.constant 0 : index
    %c0_9 = arith.constant 0 : index
    %c0_10 = arith.constant 0 : index
    %c0_11 = arith.constant 0 : index
    %9 = vector.load %arg4[%c0_8, %c0_9, %c0_10, %c0_11] : memref<1x1x16x4xbf16, #tpu.memory_space<vmem>>, vector<1x1x16x4xbf16>
    %10 = vector.shape_cast %9 : vector<1x1x16x4xbf16> to vector<1x16x4xbf16>
    %11 = arith.select %7, %8, %10 : vector<1x16x4xbf16>
    %12 = tpu.concatenate %6, %1, %11 in 0 : vector<1x16x4xbf16>, vector<4x16x4xbf16>, vector<1x16x4xbf16> -> vector<6x16x4xbf16>
    %cst_12 = arith.constant 0.000000e+00 : bf16
    %13 = vector.broadcast %cst_12 : bf16 to vector<6x1x4xbf16>
    %14 = vector.extract_strided_slice %12 {offsets = [0, 0, 0], sizes = [6, 15, 4], strides = [1, 1, 1]} : vector<6x16x4xbf16> to vector<6x15x4xbf16>
    %15 = tpu.concatenate %13, %14 in 1 : vector<6x1x4xbf16>, vector<6x15x4xbf16> -> vector<6x16x4xbf16>
    %16 = vector.extract_strided_slice %12 {offsets = [0, 1, 0], sizes = [6, 15, 4], strides = [1, 1, 1]} : vector<6x16x4xbf16> to vector<6x15x4xbf16>
    %17 = tpu.concatenate %16, %13 in 1 : vector<6x15x4xbf16>, vector<6x1x4xbf16> -> vector<6x16x4xbf16>
    %18 = tpu.concatenate %15, %12, %17 in 2 : vector<6x16x4xbf16>, vector<6x16x4xbf16>, vector<6x16x4xbf16> -> vector<6x16x12xbf16>
    %19 = vector.extract_strided_slice %18 {offsets = [0, 0, 0], sizes = [4, 16, 12], strides = [1, 1, 1]} : vector<6x16x12xbf16> to vector<4x16x12xbf16>
    %20 = vector.shape_cast %19 : vector<4x16x12xbf16> to vector<64x12xbf16>
    %c0_13 = arith.constant 0 : index
    %c0_14 = arith.constant 0 : index
    %c0_15 = arith.constant 0 : index
    %21 = vector.load %arg5[%c0_13, %c0_14, %c0_15] : memref<3x12x4xbf16, #tpu.memory_space<vmem>>, vector<1x12x4xbf16>
    %22 = vector.shape_cast %21 : vector<1x12x4xbf16> to vector<12x4xbf16>
    %cst_16 = arith.constant dense<0.000000e+00> : vector<64x4xf32>
    %23 = tpu.matmul %20, %22, %cst_16 {dimension_numbers = #tpu.dot_dimension_numbers<[1], [0], [0], [1], [0, 0, 1, 1], [], []>} : vector<64x12xbf16>, vector<12x4xbf16>, vector<64x4xf32> -> vector<64x4xf32>
    %24 = vector.extract_strided_slice %18 {offsets = [1, 0, 0], sizes = [4, 16, 12], strides = [1, 1, 1]} : vector<6x16x12xbf16> to vector<4x16x12xbf16>
    %25 = vector.shape_cast %24 : vector<4x16x12xbf16> to vector<64x12xbf16>
    %c1 = arith.constant 1 : index
    %c0_17 = arith.constant 0 : index
    %c0_18 = arith.constant 0 : index
    %26 = vector.load %arg5[%c1, %c0_17, %c0_18] : memref<3x12x4xbf16, #tpu.memory_space<vmem>>, vector<1x12x4xbf16>
    %27 = vector.shape_cast %26 : vector<1x12x4xbf16> to vector<12x4xbf16>
    %cst_19 = arith.constant dense<0.000000e+00> : vector<64x4xf32>
    %28 = tpu.matmul %25, %27, %cst_19 {dimension_numbers = #tpu.dot_dimension_numbers<[1], [0], [0], [1], [0, 0, 1, 1], [], []>} : vector<64x12xbf16>, vector<12x4xbf16>, vector<64x4xf32> -> vector<64x4xf32>
    %29 = arith.addf %23, %28 : vector<64x4xf32>
    %30 = vector.extract_strided_slice %18 {offsets = [2, 0, 0], sizes = [4, 16, 12], strides = [1, 1, 1]} : vector<6x16x12xbf16> to vector<4x16x12xbf16>
    %31 = vector.shape_cast %30 : vector<4x16x12xbf16> to vector<64x12xbf16>
    %c2 = arith.constant 2 : index
    %c0_20 = arith.constant 0 : index
    %c0_21 = arith.constant 0 : index
    %32 = vector.load %arg5[%c2, %c0_20, %c0_21] : memref<3x12x4xbf16, #tpu.memory_space<vmem>>, vector<1x12x4xbf16>
    %33 = vector.shape_cast %32 : vector<1x12x4xbf16> to vector<12x4xbf16>
    %cst_22 = arith.constant dense<0.000000e+00> : vector<64x4xf32>
    %34 = tpu.matmul %31, %33, %cst_22 {dimension_numbers = #tpu.dot_dimension_numbers<[1], [0], [0], [1], [0, 0, 1, 1], [], []>} : vector<64x12xbf16>, vector<12x4xbf16>, vector<64x4xf32> -> vector<64x4xf32>
    %35 = arith.addf %29, %34 : vector<64x4xf32>
    %c0_23 = arith.constant 0 : index
    %c0_24 = arith.constant 0 : index
    %36 = vector.load %arg6[%c0_23, %c0_24] : memref<1x4xf32, #tpu.memory_space<vmem>>, vector<1x4xf32>
    %37 = vector.broadcast %36 : vector<1x4xf32> to vector<64x4xf32>
    %38 = arith.addf %35, %37 : vector<64x4xf32>
    %cst_25 = arith.constant 0.000000e+00 : f32
    %39 = vector.broadcast %cst_25 : f32 to vector<64x4xf32>
    %40 = arith.maximumf %38, %39 : vector<64x4xf32>
    %41 = vector.shape_cast %40 : vector<64x4xf32> to vector<1x4x16x4xf32>
    %c0_26 = arith.constant 0 : index
    %c0_27 = arith.constant 0 : index
    %c0_28 = arith.constant 0 : index
    %c0_29 = arith.constant 0 : index
    %42 = vector.load %arg7[%c0_26, %c0_27, %c0_28, %c0_29] : memref<1x4x16x4xf32, #tpu.memory_space<vmem>>, vector<1x4x16x4xf32>
    tpu.vector_store %arg7[%c0_26, %c0_27, %c0_28, %c0_29], %41 {strides = array<i32>} : memref<1x4x16x4xf32, #tpu.memory_space<vmem>>, vector<1x4x16x4xf32>,
    return
  }
  func.func @transform_0(%arg0: i32, %arg1: i32) -> (i32, i32, i32, i32) {
    %c0_i32 = arith.constant 0 : i32
    %c0_i32_0 = arith.constant 0 : i32
    %c0_i32_1 = arith.constant 0 : i32
    return %arg0, %arg1, %c0_i32, %c0_i32_0 : i32, i32, i32, i32
  }
  func.func @transform_1(%arg0: i32, %arg1: i32) -> (i32, i32, i32, i32) {
    %c4_i32 = arith.constant 4 : i32
    %0 = arith.muli %arg1, %c4_i32 : i32
    %c1_i32 = arith.constant 1 : i32
    %1 = arith.subi %0, %c1_i32 : i32
    %c0_i32 = arith.constant 0 : i32
    %2 = arith.maxsi %1, %c0_i32 : i32
    %c0_i32_0 = arith.constant 0 : i32
    %c0_i32_1 = arith.constant 0 : i32
    %c0_i32_2 = arith.constant 0 : i32
    return %arg0, %2, %c0_i32_0, %c0_i32_1 : i32, i32, i32, i32
  }
  func.func @transform_2(%arg0: i32, %arg1: i32) -> (i32, i32, i32, i32) {
    %c1_i32 = arith.constant 1 : i32
    %0 = arith.addi %arg1, %c1_i32 : i32
    %c4_i32 = arith.constant 4 : i32
    %1 = arith.muli %0, %c4_i32 : i32
    %c15_i32 = arith.constant 15 : i32
    %2 = arith.minsi %1, %c15_i32 : i32
    %c0_i32 = arith.constant 0 : i32
    %c0_i32_0 = arith.constant 0 : i32
    %c0_i32_1 = arith.constant 0 : i32
    return %arg0, %2, %c0_i32, %c0_i32_0 : i32, i32, i32, i32
  }
  func.func @transform_3(%arg0: i32, %arg1: i32) -> (i32, i32, i32) {
    %c0_i32 = arith.constant 0 : i32
    %c0_i32_0 = arith.constant 0 : i32
    %c0_i32_1 = arith.constant 0 : i32
    %c0_i32_2 = arith.constant 0 : i32
    return %c0_i32, %c0_i32_0, %c0_i32_1 : i32, i32, i32
  }
  func.func @transform_4(%arg0: i32, %arg1: i32) -> (i32, i32) {
    %c0_i32 = arith.constant 0 : i32
    %c0_i32_0 = arith.constant 0 : i32
    %c0_i32_1 = arith.constant 0 : i32
    return %c0_i32, %c0_i32_0 : i32, i32
  }
  func.func @transform_5(%arg0: i32, %arg1: i32) -> (i32, i32, i32, i32) {
    %c0_i32 = arith.constant 0 : i32
    %c0_i32_0 = arith.constant 0 : i32
    %c0_i32_1 = arith.constant 0 : i32
    return %arg0, %arg1, %c0_i32, %c0_i32_0 : i32, i32, i32, i32
  }
}

</mosaic_0001>

<bundles_post_ra>
// kernel: up_conv_block_forward.5
= control target key start
LH: loop header
LB: loop body
LE: loop exit
PB: predicated region body
PF: predicated region fallthrough
CT: control target
= control target key end

     0   :  { %s1119_s18 = smov 0   ;;  %s1121_s19 = smov 0   ;;  %s1400_s0 = inlined_call_operand.vmem [shape: bf16[2,16,16,4], index: 0, kind: input, shape index: {}, may-alias: {0,1,2}]   ;;  %s1401_s1 = inlined_call_operand.vmem [shape: bf16[2,16,16,4], index: 1, kind: input, shape index: {}, may-alias: {0,1,2}]   ;;  %s1402_s2 = inlined_call_operand.vmem [shape: bf16[2,16,16,4], index: 2, kind: input, shape index: {}, may-alias: {0,1,2}]   ;;  %s1403_s3 = inlined_call_operand.vmem [shape: bf16[3,12,4], index: 3, kind: input, shape index: {}]   ;;  %s1404_s4 = inlined_call_operand.vmem [shape: f32[1,4], index: 4, kind: input, shape index: {}]   ;;  %s1405_s5 = inlined_call_operand.vmem [shape: f32[2,16,16,4], index: 5, kind: output, shape index: {}]  }
   0x1   :  { %s1123_s20 = smov 0   ;;  %s1125_s21 = smov 0  }
   0x2   :  { %s1127_s22 = smov 0  }
   0x3 LB: > { %s24_s23 = sadd.s32 1, %s1077_s20  ;;  %s27_s24 = sadd.s32 1, %s1081_s21  ;;  %s1085_s22 = sphi %s1127_s22, %s15_s22   ;;  %s1081_s21 = sphi %s1125_s21, %s1414_s21   ;;  %s1077_s20 = sphi %s1123_s20, %s1413_s20   ;;  %s1073_s19 = sphi %s1121_s19, %s1412_s19   ;;  %s1069_s18 = sphi %s1119_s18, %s1411_s18  }
   0x4   : > { %p25_p0 = scmp.ge.s32.totalorder %s24_s23, 4  ;;  %p914_p1 = scmp.ge.s32.totalorder %s1085_s22, 1 }
   0x5   : > { %p273_p2 = scmp.lt.s32.totalorder %s1085_s22, 9 }
   0x6   : > { %s1416_s23 = smov (%p25_p0, %s24_s23), 0  ;;  %s1418_s24 = smov (!%p25_p0, %s27_s24), %s1081_s21 }
   0x7   : > { %p274_p3 = pnand %p914_p1, %p273_p2  ;;  %p29_p4 = scmp.ge.s32.totalorder %s1418_s24, 2 }
   0x8   : > { %s1152_s25 = sshll.u32 (!%p274_p3), %s1069_s18, 2  ;;  %p338_p5 = scmp.lt.s32.totalorder (!%p274_p3), %s1073_s19, 1 }
   0x9   : > { %s1420_s24 = smov (%p29_p4, %s1418_s24), 0  ;;  %277 = sbr.rel (%p274_p3) target bundleno = 327 (0x147), region = 40 }
   0xa   : > { %p340_p6 = scmp.lt.s32.totalorder (!%p274_p3), %s1152_s25, 15  ;;  %s920_s29 = sadd.s32 (!%p274_p3), 4294967295, %s1152_s25 }
   0xb   : > { %p350_p7 = scmp.gt.s32.totalorder (!%p274_p3), %s920_s29, 0  ;;  %p921_p8 = scmp.lt.s32.totalorder (!%p274_p3), %s920_s29, 15 }
   0xc   : > { %p402_p9 = scmp.eq.s32.totalorder (!%p274_p3), %s1069_s18, 0  ;;  %s993_s11 = sadd.s32 (!%p274_p3), 4, %s1152_s25 }
   0xd   : > { %s1087_s12 = smov (!%p274_p3), 4   ;;  %p1207_p10 = scmp.lt.s32.totalorder (!%p274_p3), %s993_s11, 15 }
   0xe   : > { %s1422_s19 = smov (!%p338_p5, %s1073_s19), 1  ;;  %vm523_vm0 = vcmask 1047552   ;;  %vm524_vm1 = vsmask.f32 7424  ;;  %p410_p11 = scmp.eq.s32.totalorder %s1069_s18, 3  ;;  %vm613_vm5 = vcmask 1045504  }
   0xf   : > { %s341_s26 = scalar_select %p340_p6, %s1152_s25, 15  ;;  %vm1198_vm2 = vmand %vm523_vm0, %vm524_vm1  ;;  %v968_v53 = vld [vmem:[%s1403_s3] sm:$0xf]  ;;  %v998_v54 = vld [vmem:[%s1403_s3] sm:$0x30]  ;;  %vm496_vm6 = vcmask 1040384  }
  0x10   : > { %s1156_s27 = sshll.u32 %s1422_s19, 5  ;;  %s1426_s11 = smov (!%p1207_p10, %s993_s11), 15  ;;  %v969_v55 = vor.u32 %v998_v54, %v968_v53  ;;  %v960_v57 = vld [vmem:[%s1403_s3 + $0x8] sm:$0xf]  ;;  %v999_v58 = vld [vmem:[%s1403_s3 + $0x8] sm:$0x30] }
  0x11   : > { %s916_s28 = sshll.u32 %s341_s26, 1  ;;  %s1428_s11 = smov (!%p1207_p10, %s1426_s11), 15  ;;  %v961_v59 = vor.u32 %v999_v58, %v960_v57  ;;  %v978_v61 = vld [vmem:[%s1403_s3 + $0x10] sm:$0xf]  ;;  %v1000_v62 = vld [vmem:[%s1403_s3 + $0x10] sm:$0x30] }
  0x12   : > { %s1160_s30 = sadd.s32 %s1156_s27, %s916_s28  ;;  %s933_s25 = sshll.u32 %s1428_s11, 1  ;;  %v654_v56 = vsel %vm613_vm5, %v969_v55, 0  ;;  %v979_v63 = vor.u32 %v1000_v62, %v978_v61  ;;  %vm497_vm7 = vsmask.f32 256  ;;  %vm562_vm9 = vcmask 31744  }
  0x13   : > { %s918_s6 = sshll.u32 %s1160_s30, 2  ;;  %s375_s7 = sadd.s32 %s933_s25, %s1156_s27  ;;  %1002 = vmatpush.bf16.msra.mxu1 %v654_v56  ;;  %v615_v60 = vsel %vm613_vm5, %v961_v59, 0  ;;  %vm1300_vm8 = vmand %vm496_vm6, %vm497_vm7  ;;  %vm581_vm10 = vcmask 64512   ;;  %vm604_vm11 = vcmask 97280  }
  0x14   : > { %s346_s9 = scalar_lea.vmem %s1400_s0, %s918_s6  ;;  %s935_s18 = sshll.u32 %s375_s7, 2  ;;  %624 = vmatpush.bf16.msra.mxu0 %v615_v60  ;;  %1001 = vmatpush.bf16.msra.mxu3 %v615_v60 }
  0x15   : > { %v1166_v0 = vld [vmem:[%s346_s9 + $0x10] sm:$0xff]  ;;  %v1168_v1 = vld [vmem:[%s346_s9 + $0x8] sm:$0xff]  ;;  %v1170_v2 = vld [vmem:[%s346_s9] sm:$0xff]  ;;  %s351_s10 = scalar_select %p350_p7, %s920_s29, 0 }
  0x16   : > { %v1172_v3 = vld [vmem:[%s346_s9 + $0x18] sm:$0xff]  ;;  %538 = vrot.lane.b32.xlu1 %v1166_v0, %s1087_s12  ;;  %536 = vrot.lane.b32.xlu0 %v1168_v1, %s1087_s12  ;;  %v470_v4 = vshrl.u32 %v1166_v0, 16  ;;  %v473_v5 = vshll.u32 %v1166_v0, 16  ;;  %v463_v6 = vshrl.u32 %v1168_v1, 16  ;;  %v466_v7 = vshll.u32 %v1168_v1, 16  ;;  %s1088_s29 = smov 8  }
  0x17   : > { %s1424_s10 = smov (!%p921_p8, %s351_s10), 15  ;;  %534 = vrot.lane.b32.xlu2 %v1170_v2, %s1087_s12  ;;  %v456_v8 = vshrl.u32 %v1170_v2, 16  ;;  %v459_v9 = vshll.u32 %v1170_v2, 16  ;;  %v480_v10 = vshll.u32 %v1172_v3, 16  ;;  %v477_v19 = vshrl.u32 %v1172_v3, 16  ;;  %s939_s7 = sshll.u32 %s1160_s30, 3 }
  0x18   : > { %s405_s13 = scalar_select %p402_p9, 1, 0  ;;  %v511_v11 = vrot.slane %v473_v5, 1  ;;  %v509_v12 = vrot.slane %v466_v7, 1  ;;  %663 = vmatpush.bf16.msrb.mxu0 %v654_v56  ;;  %v696_v2 = vsel %vm613_vm5, %v979_v63, 0 }
  0x19   : > { %s926_s14 = sshll.u32 %s1424_s10, 1  ;;  %v507_v14 = vrot.slane %v459_v9, 1  ;;  %v513_v20 = vrot.slane %v480_v10, 1  ;;  %s377_s10 = scalar_lea.vmem %s1402_s2, %s935_s18  ;;  %v458_v51 = vrot.slane %v456_v8, 7  ;;  %1003 = vmatpush.bf16.msra.mxu2 %v696_v2  ;;  %v479_v1 = vrot.slane %v477_v19, 7 }
  0x1a   : > { %s358_s15 = sadd.s32 %s926_s14, %s1156_s27  ;;  %v512_v15 = vor.u32 %v511_v11, %v470_v4  ;;  %v510_v16 = vor.u32 %v509_v12, %v463_v6  ;;  %v406_v17 = vstv %s405_s13  ;;  %v411_v37 = vld [vmem:[%s377_s10] sm:$0xf]  ;;  %v412_v38 = vld [vmem:[%s377_s10 + $0x4] sm:$0xf]  ;;  %s1367_s9 = scalar_lea.vmem %s1405_s5, %s939_s7 }
  0x1b   : > { %s928_s17 = sshll.u32 %s358_s15, 2  ;;  %v508_v18 = vor.u32 %v507_v14, %v456_v8  ;;  %vm407_vm3 = vcmp.eq.s32.totalorder %v406_v17, 1  ;;  %v514_v30 = vor.u32 %v513_v20, %v477_v19  ;;  %v461_v52 = vor.u32 %v459_v9, %v458_v51 }
  0x1c   : > { %s360_s28 = scalar_lea.vmem %s1401_s1, %s928_s17  ;;  %v529_v21 = vsel %vm1198_vm2, %v512_v15, 0  ;;  %v528_v22 = vsel %vm1198_vm2, %v510_v16, 0  ;;  %v472_v15 = vrot.slane %v470_v4, 7  ;;  %v465_v16 = vrot.slane %v463_v6, 7 }
  0x1d   : > { %v403_v23 = vld [vmem:[%s360_s28] sm:$0xf]  ;;  %v404_v24 = vld [vmem:[%s360_s28 + $0x4] sm:$0xf]  ;;  %v527_v25 = vsel %vm1198_vm2, %v508_v18, 0  ;;  %v530_v34 = vsel %vm1198_vm2, %v514_v30, 0 }
  0x1e   : > { %v408_v26 = vsel %vm407_vm3, 0, %v403_v23  ;;  %v409_v27 = vsel %vm407_vm3, 0, %v404_v24  ;;  %556 = vrot.lane.b32.xlu1 %v529_v21, %s1088_s29  ;;  %554 = vrot.lane.b32.xlu0 %v528_v22, %s1088_s29  ;;  %s413_s6 = scalar_select %p410_p11, 1, 0  ;;  %v500_v11 = vsel %vm1300_vm8, 0, %v461_v52  ;;  %v475_v20 = vor.u32 %v473_v5, %v472_v15 }
  0x1f   : > { %v430_v28 = vunpack.c.l.b16 %v408_v26  ;;  %v431_v29 = vunpack.c.l.b16 %v409_v27  ;;  %552 = vrot.lane.b32.xlu2 %v527_v25, %s1088_s29  ;;  %v468_v21 = vor.u32 %v466_v7, %v465_v16  ;;  %v482_v7 = vor.u32 %v480_v10, %v479_v1 }
  0x20   : > { %v414_v32 = vstv %s413_s6  ;;  %v502_v22 = vsel %vm1300_vm8, 0, %v475_v20 }
  0x21   : > { %v1243_v31 = vpack.c.b16 %v431_v29, %v430_v28  ;;  %vm415_vm4 = vcmp.eq.s32.totalorder %v414_v32, 1  ;;  %v501_v23 = vsel %vm1300_vm8, 0, %v468_v21  ;;  %v503_v29 = vsel %vm1300_vm8, 0, %v482_v7 }
  0x22   : > { %v416_v39 = vsel %vm415_vm4, 0, %v411_v37  ;;  %v417_v40 = vsel %vm415_vm4, 0, %v412_v38 }
  0x23   : > { %v452_v33 = vshll.u32 %v1243_v31, 16  ;;  %v449_v35 = vshrl.u32 %v1243_v31, 16  ;;  %v440_v42 = vunpack.c.l.b16 %v416_v39  ;;  %v441_v43 = vunpack.c.l.b16 %v417_v40 }
  0x25   : > { %v505_v36 = vrot.slane %v452_v33, 1  ;;  %v1262_v44 = vpack.c.b16 %v441_v43, %v440_v42  ;;  %v451_v5 = vrot.slane %v449_v35, 7 }
  0x26   : > { %540 = vrot.lane.b32.xlu0 %v1172_v3, %s1087_s12  ;;  %558 = vrot.lane.b32.xlu1 %v530_v34, %s1088_s29 }
  0x27   : > { %v506_v41 = vor.u32 %v505_v36, %v449_v35  ;;  %532 = vrot.lane.b32.xlu2 %v1243_v31, %s1087_s12  ;;  %v484_v46 = vshrl.u32 %v1262_v44, 16  ;;  %v487_v47 = vshll.u32 %v1262_v44, 16  ;;  %v454_v27 = vor.u32 %v452_v33, %v451_v5 }
  0x29   : > { %v526_v45 = vsel %vm1198_vm2, %v506_v41, 0  ;;  %v515_v48 = vrot.slane %v487_v47, 1  ;;  %v499_v19 = vsel %vm1300_vm8, 0, %v454_v27  ;;  %v486_v31 = vrot.slane %v484_v46, 7 }
  0x2b   : > { %v516_v49 = vor.u32 %v515_v48, %v484_v46  ;;  %v489_v33 = vor.u32 %v487_v47, %v486_v31  ;;  %v1046_v48 = vld [vmem:[%s1404_s4] ss:$0 sm:$0xff] }
  0x2d   : > { %v531_v50 = vsel %vm1198_vm2, %v516_v49, 0  ;;  %v504_v37 = vsel %vm1300_vm8, 0, %v489_v33 }
  0x2e   : > { %550 = vrot.lane.b32.xlu0 %v526_v45, %s1088_s29  ;;  %542 = vrot.lane.b32.xlu1 %v1262_v44, %s1087_s12 }
  0x2f   : > { %560 = vrot.lane.b32.xlu2 %v531_v50, %s1088_s29 }
  0x71   : > { %v535_v9 = vpop.permute.xlu2 %534 }
  0x72   : > { %v568_v12 = vsel %vm562_vm9, %v500_v11, %v535_v9 }
  0x79   : > { %v553_v13 = vpop.permute.xlu2 %552 }
  0x7a   : > { %v585_v14 = vsel %vm581_vm10, %v568_v12, %v553_v13 }
  0x7b   : > { %971 = vmatmul.msk.bf16.vlgmr.msra.gmra.mxu1 %vm604_vm11, %v585_v14  ;;  %962 = vmatmul.msk.bf16.vlgmr.msra.gmra.mxu0 %vm604_vm11, %v585_v14 }
  0x7c   : > { %705 = vmatpush.bf16.msra.mxu0 %v696_v2 }
  0x81   : > { %v533_v30 = vpop.permute.xlu2 %532 }
  0x82   : > { %v565_v35 = vsel %vm562_vm9, %v499_v19, %v533_v30 }
  0x88   : > { %v539_v17 = vpop.permute.xlu1 %538  ;;  %v537_v18 = vpop.permute.xlu0 %536 }
  0x89   : > { %v574_v24 = vsel %vm562_vm9, %v502_v22, %v539_v17  ;;  %v571_v4 = vsel %vm562_vm9, %v501_v23, %v537_v18  ;;  %v561_v40 = vpop.permute.xlu2 %560 }
  0x90   : > { %v557_v25 = vpop.permute.xlu1 %556  ;;  %v555_v6 = vpop.permute.xlu0 %554 }
  0x91   : > { %v587_v26 = vsel %vm581_vm10, %v571_v4, %v555_v6  ;;  %v589_v0 = vsel %vm581_vm10, %v574_v24, %v557_v25 }
  0x92   : > { %963 = vmatmul.msk.bf16.vlgmr.msra.gmra.mxu3 %vm604_vm11, %v587_v26  ;;  %972 = vmatmul.msk.bf16.gmra.mxu1 %vm604_vm11, %v587_v26 }
  0x93   : > { %981 = vmatmul.msk.bf16.vlgmr.msra.gmra.mxu2 %vm604_vm11, %v589_v0 }
  0x98   : > { %v541_v28 = vpop.permute.xlu0 %540  ;;  %v559_v34 = vpop.permute.xlu1 %558 }
  0x99   : > { %v577_v32 = vsel %vm562_vm9, %v503_v29, %v541_v28 }
  0x9a   : > { %v591_v3 = vsel %vm581_vm10, %v577_v32, %v559_v34 }
  0xa0   : > { %v551_v36 = vpop.permute.xlu0 %550  ;;  %v543_v38 = vpop.permute.xlu1 %542 }
  0xa1   : > { %v583_v10 = vsel %vm581_vm10, %v565_v35, %v551_v36  ;;  %v580_v39 = vsel %vm562_vm9, %v504_v37, %v543_v38 }
  0xa2   : > { %964 = vmatmul.msk.bf16.gmra.mxu3 %vm604_vm11, %v589_v0  ;;  %970 = vmatmul.msk.bf16.vlgmr.msrb.gmra.mxu0 %vm604_vm11, %v583_v10  ;;  %v593_v41 = vsel %vm581_vm10, %v580_v39, %v561_v40 }
  0xa3   : > { %973 = vmatmul.msk.bf16.gmra.mxu1 %vm604_vm11, %v589_v0  ;;  %982 = vmatmul.msk.bf16.gmra.mxu2 %vm604_vm11, %v591_v3 }
  0xb2   : > { %965 = vmatmul.msk.bf16.gmra.mxu3 %vm604_vm11, %v591_v3  ;;  %980 = vmatmul.msk.bf16.vlgmr.msra.gmra.mxu0 %vm604_vm11, %v587_v26 }
  0xb3   : > { %983 = vmatmul.msk.bf16.gmra.mxu2 %vm604_vm11, %v593_v41 }
  0xf8   : > { %v670_v42 = vpop.f32.mrf.mxu1  ;;  %v626_v43 = vpop.f32.mrf.mxu0 }
 0x100   : > { %v672_v44 = vpop.f32.mrf.mxu1  ;;  %v628_v49 = vpop.f32.mrf.mxu0 }
 0x10f   : > { %v675_v56 = vpop.f32.mrf.mxu1 }
 0x115   : > { %v631_v45 = vpop.f32.mrf.mxu3 }
 0x116   : > { %v671_v46 = vadd.f32 %v670_v42, %v631_v45  ;;  %v712_v47 = vpop.f32.mrf.mxu2 }
 0x117   : > { %v677_v9 = vpop.f32.mrf.mxu1 }
 0x118   : > { %v729_v50 = vadd.f32 %v712_v47, %v671_v46 }
 0x11a   : > { %v741_v51 = vadd.f32 %v1046_v48, %v729_v50 }
 0x11c   : > { %v749_v52 = vmax.f32 %v741_v51, 0.0 }
 0x11d   : > { %v633_v53 = vpop.f32.mrf.mxu3 }
 0x11e   : > { %757 = vst.msk [vmem:[%s1367_s9 + $0x10] sm:$0xff] %vm562_vm9, %v749_v52  ;;  %v673_v54 = vadd.f32 %v672_v44, %v633_v53  ;;  %v714_v55 = vpop.f32.mrf.mxu2 }
 0x11f   : > { %v665_v57 = vpop.f32.mrf.mxu0 }
 0x120   : > { %v730_v58 = vadd.f32 %v714_v55, %v673_v54  ;;  %v666_v14 = vadd.f32 %v665_v57, %v626_v43  ;;  %v680_v23 = vpop.f32.mrf.mxu1 }
 0x122   : > { %v742_v59 = vadd.f32 %v1046_v48, %v730_v58 }
 0x124   : > { %v750_v60 = vmax.f32 %v742_v59, 0.0 }
 0x125   : > { %v636_v61 = vpop.f32.mrf.mxu3 }
 0x126   : > { %758 = vst.msk [vmem:[%s1367_s9 + $0x18] sm:$0xff] %vm562_vm9, %v750_v60  ;;  %v676_v62 = vadd.f32 %v675_v56, %v636_v61  ;;  %v717_v63 = vpop.f32.mrf.mxu2 }
 0x127   : > { %v667_v2 = vpop.f32.mrf.mxu0 }
 0x128   : > { %v731_v8 = vadd.f32 %v717_v63, %v676_v62  ;;  %v668_v6 = vadd.f32 %v667_v2, %v628_v49  ;;  %v682_v30 = vpop.f32.mrf.mxu1 }
 0x12a   : > { %v743_v11 = vadd.f32 %v1046_v48, %v731_v8 }
 0x12c   : > { %v751_v12 = vmax.f32 %v743_v11, 0.0 }
 0x12d   : > { %v638_v13 = vpop.f32.mrf.mxu3 }
 0x12e   : > { %759 = vst.msk [vmem:[%s1367_s9 + $0x20] sm:$0xff] %vm562_vm9, %v751_v12  ;;  %v678_v15 = vadd.f32 %v677_v9, %v638_v13  ;;  %v719_v16 = vpop.f32.mrf.mxu2 }
 0x12f   : > { %v707_v17 = vpop.f32.mrf.mxu0 }
 0x130   : > { %v732_v18 = vadd.f32 %v719_v16, %v678_v15  ;;  %v727_v20 = vadd.f32 %v707_v17, %v666_v14 }
 0x132   : > { %v744_v21 = vadd.f32 %v1046_v48, %v732_v18  ;;  %v739_v22 = vadd.f32 %v1046_v48, %v727_v20 }
 0x134   : > { %v752_v24 = vmax.f32 %v744_v21, 0.0  ;;  %v747_v4 = vmax.f32 %v739_v22, 0.0 }
 0x135   : > { %v641_v25 = vpop.f32.mrf.mxu3 }
 0x136   : > { %760 = vst.msk [vmem:[%s1367_s9 + $0x28] sm:$0xff] %vm562_vm9, %v752_v24  ;;  %v681_v26 = vadd.f32 %v680_v23, %v641_v25  ;;  %v722_v0 = vpop.f32.mrf.mxu2 }
 0x137   : > { %755 = vst.msk [vmem:[%s1367_s9] sm:$0xff] %vm562_vm9, %v747_v4  ;;  %v709_v1 = vpop.f32.mrf.mxu0 }
 0x138   : > { %v733_v5 = vadd.f32 %v722_v0, %v681_v26  ;;  %v728_v7 = vadd.f32 %v709_v1, %v668_v6 }
 0x13a   : > { %v745_v27 = vadd.f32 %v1046_v48, %v733_v5  ;;  %v740_v28 = vadd.f32 %v1046_v48, %v728_v7 }
 0x13c   : > { %v753_v29 = vmax.f32 %v745_v27, 0.0  ;;  %v748_v19 = vmax.f32 %v740_v28, 0.0 }
 0x13d   : > { %v643_v32 = vpop.f32.mrf.mxu3 }
 0x13e   : > { %761 = vst.msk [vmem:[%s1367_s9 + $0x30] sm:$0xff] %vm562_vm9, %v753_v29  ;;  %v683_v34 = vadd.f32 %v682_v30, %v643_v32  ;;  %v724_v35 = vpop.f32.mrf.mxu2 }
 0x13f   : > { %756 = vst.msk [vmem:[%s1367_s9 + $0x8] sm:$0xff] %vm562_vm9, %v748_v19 }
 0x140   : > { %v734_v36 = vadd.f32 %v724_v35, %v683_v34 }
 0x142   : > { %v746_v3 = vadd.f32 %v1046_v48, %v734_v36 }
 0x144   : > { %v754_v10 = vmax.f32 %v746_v3, 0.0 }
 0x146   : > { %762 = vst.msk [vmem:[%s1367_s9 + $0x38] sm:$0xff] %vm562_vm9, %v754_v10 }
 0x147 PF: > { %s15_s22 = sadd.s32 1, %s1085_s22   ;;  %s1411_s18 = smov %s1077_s20 }
 0x148   : > { %p12_p12 = scmp.ge.s32.totalorder %s15_s22, 10   ;;  %s1412_s19 = smov %s1081_s21 }
 0x149   : > { %s1413_s20 = smov %s1416_s23  ;;  %s1414_s21 = smov %s1420_s24 }
 0x14a   :  { %14 = sbr.rel (!%p12_p12) target bundleno = 3 (0x3), region = 78 }

// kernel: up_conv_block_forward.3
= control target key start
LH: loop header
LB: loop body
LE: loop exit
PB: predicated region body
PF: predicated region fallthrough
CT: control target
= control target key end

     0   :  { %s1155_s18 = smov 0   ;;  %s1157_s19 = smov 0   ;;  %s1442_s0 = inlined_call_operand.vmem [shape: bf16[2,8,8,8], index: 0, kind: input, shape index: {}, may-alias: {0,1,2}]   ;;  %s1443_s1 = inlined_call_operand.vmem [shape: bf16[2,8,8,8], index: 1, kind: input, shape index: {}, may-alias: {0,1,2}]   ;;  %s1444_s2 = inlined_call_operand.vmem [shape: bf16[2,8,8,8], index: 2, kind: input, shape index: {}, may-alias: {0,1,2}]   ;;  %s1445_s3 = inlined_call_operand.vmem [shape: bf16[8,4], index: 3, kind: input, shape index: {}]   ;;  %s1446_s4 = inlined_call_operand.vmem [shape: f32[1,4], index: 4, kind: input, shape index: {}]   ;;  %s1447_s5 = inlined_call_operand.vmem [shape: bf16[2,16,16,4], index: 5, kind: output, shape index: {}]  }
   0x1   :  { %s1159_s20 = smov 0   ;;  %s1161_s21 = smov 0  }
   0x2   :  { %s1163_s22 = smov 0  }
   0x3 LB: > { %s24_s23 = sadd.s32 1, %s1115_s20  ;;  %s27_s24 = sadd.s32 1, %s1119_s21  ;;  %s1123_s22 = sphi %s1163_s22, %s15_s22   ;;  %s1119_s21 = sphi %s1161_s21, %s1452_s21   ;;  %s1115_s20 = sphi %s1159_s20, %s1451_s20   ;;  %s1111_s19 = sphi %s1157_s19, %s1450_s19   ;;  %s1107_s18 = sphi %s1155_s18, %s1449_s18  }
   0x4   : > { %p25_p0 = scmp.ge.s32.totalorder %s24_s23, 4  ;;  %p998_p1 = scmp.ge.s32.totalorder %s1123_s22, 1 }
   0x5   : > { %p270_p2 = scmp.lt.s32.totalorder %s1123_s22, 9 }
   0x6   : > { %s1454_s23 = smov (%p25_p0, %s24_s23), 0  ;;  %s1456_s24 = smov (!%p25_p0, %s27_s24), %s1119_s21 }
   0x7   : > { %p271_p3 = pnand %p998_p1, %p270_p2  ;;  %p29_p4 = scmp.ge.s32.totalorder %s1456_s24, 2 }
   0x8   : > { %s999_s27 = sshll.u32 (!%p271_p3), %s1107_s18, 1  ;;  %p332_p5 = scmp.lt.s32.totalorder (!%p271_p3), %s1111_s19, 1 }
   0x9   : > { %s1458_s24 = smov (%p29_p4, %s1456_s24), 0  ;;  %274 = sbr.rel (%p271_p3) target bundleno = 239 (0xef), region = 40 }
   0xa   : > { %p334_p6 = scmp.lt.s32.totalorder (!%p271_p3), %s999_s27, 7  ;;  %s1003_s28 = sadd.s32 (!%p271_p3), 4294967295, %s999_s27 }
   0xb   : > { %p343_p7 = scmp.gt.s32.totalorder (!%p271_p3), %s1003_s28, 0  ;;  %p1004_p8 = scmp.lt.s32.totalorder (!%p271_p3), %s1003_s28, 7 }
   0xc   : > { %s1040_s16 = sadd.s32 (!%p271_p3), 2, %s999_s27 }
   0xd   : > { %p359_p9 = scmp.lt.s32.totalorder (!%p271_p3), %s1040_s16, 7 }
   0xe   : > { %v389_v0 = vld [vmem:[%s1445_s3] sm:$0xf]  ;;  %vm407_vm0 = vcmask 1043456   ;;  %s1460_s19 = smov (!%p332_p5, %s1111_s19), 1  ;;  %s1462_s28 = smov (!%p343_p7, %s1003_s28), 0  ;;  %vm400_vm1 = vcmask 64512  }
   0xf   : > { %v409_v1 = vsel %vm407_vm0, %v389_v0, 0  ;;  %s335_s29 = scalar_select %p334_p6, %s999_s27, 7  ;;  %vm452_vm2 = vcmask 1040384   ;;  %vm465_vm3 = vcmask 1046528   ;;  %v1215_v35 = vld [vmem:[%s1446_s4] ss:$0 sm:$0xff] }
  0x10   : > { %418 = vmatpush.bf16.msra.mxu0 %v409_v1  ;;  %1043 = vmatpush.bf16.msra.mxu1 %v409_v1  ;;  %s1000_s30 = sshll.u32 %s1460_s19, 3  ;;  %s1464_s28 = smov (!%p1004_p8, %s1462_s28), 7  ;;  %v1222_v45 = vrot.slane %v1215_v35, 2  ;;  %v1225_v46 = vrot.slane %v1215_v35, 4  ;;  %v1228_v47 = vrot.slane %v1215_v35, 6  ;;  %vm847_vm4 = vcmask 27648  }
  0x11   : > { %s337_s6 = sadd.s32 %s1000_s30, %s335_s29  ;;  %s350_s11 = sadd.s32 %s1464_s28, %s1000_s30 }
  0x12   : > { %s1001_s7 = sshll.u32 %s337_s6, 2  ;;  %s1010_s12 = sshll.u32 %s350_s11, 2 }
  0x13   : > { %s339_s10 = scalar_lea.vmem %s1442_s0, %s1001_s7  ;;  %s352_s15 = scalar_lea.vmem %s1443_s1, %s1010_s12 }
  0x14   : > { %v1041_v2 = vld [vmem:[%s339_s10 - $0x4] sm:$0xf0]  ;;  %s1466_s16 = smov (!%p359_p9, %s1040_s16), 7  ;;  %v1027_v5 = vld [vmem:[%s339_s10 + $0x4] sm:$0xf]  ;;  %s1017_s6 = sshll.u32 %s1107_s18, 2 }
  0x15   : > { %v1023_v3 = vld [vmem:[%s352_s15] sm:$0xf]  ;;  %s1468_s16 = smov (!%p359_p9, %s1466_s16), 7  ;;  %p1292_p10 = scmp.lt.s32.totalorder %s1017_s6, 15 }
  0x16   : > { %v1024_v4 = vor.u32 %v1041_v2, %v1023_v3  ;;  %s366_s17 = sadd.s32 %s1000_s30, %s1468_s16  ;;  %s1019_s8 = sshll.u32 %s1460_s19, 5 }
  0x17   : > { %s1016_s25 = sshll.u32 %s366_s17, 2  ;;  %s1470_s6 = smov (!%p1292_p10, %s1017_s6), 15 }
  0x18   : > { %1029 = vmatmul.msk.bf16.vlgmr.msra.gmra.mxu0 %vm400_vm1, %v1024_v4  ;;  %s368_s28 = scalar_lea.vmem %s1444_s2, %s1016_s25  ;;  %s1018_s18 = sshll.u32 %s1470_s6, 1 }
  0x19   : > { %v1042_v6 = vld [vmem:[%s368_s28 - $0x4] sm:$0xf0]  ;;  %s1343_s19 = sadd.s32 %s1019_s8, %s1018_s18 }
  0x1a   : > { %v1028_v7 = vor.u32 %v1042_v6, %v1027_v5  ;;  %s1020_s9 = sshll.u32 %s1343_s19, 2 }
  0x1b   : > { %s1380_s12 = scalar_lea.vmem %s1447_s5, %s1020_s9 }
  0x1c   : > { %1030 = vmatmul.msk.bf16.vlgmr.msra.gmra.mxu1 %vm400_vm1, %v1028_v7 }
  0x95   : > { %v420_v8 = vpop.f32.mrf.mxu0 }
  0x96   : > { %v432_v12 = vmul.f32 0.25, %v420_v8 }
  0x99   : > { %v425_v11 = vpop.f32.mrf.mxu1 }
  0x9a   : > { %v436_v13 = vmul.f32 0.25, %v425_v11  ;;  %v1203_v14 = vmul.f32 0.75, %v425_v11 }
  0x9d   : > { %v422_v9 = vpop.f32.mrf.mxu0 }
  0x9e   : > { %v430_v10 = vmul.f32 0.75, %v422_v9  ;;  %v433_v15 = vmul.f32 0.25, %v422_v9 }
  0xa0   : > { %v434_v16 = vadd.f32 %v432_v12, %v430_v10  ;;  %v438_v17 = vadd.f32 %v436_v13, %v430_v10  ;;  %v435_v18 = vadd.f32 %v433_v15, %v1203_v14 }
  0xa1   : > { %v427_v41 = vpop.f32.mrf.mxu1 }
  0xa2   : > { %v444_v19 = vrot.slane %v434_v16, 7  ;;  %v457_v20 = vrot.slane %v434_v16, 1  ;;  %v445_v21 = vrot.slane %v438_v17, 7  ;;  %v446_v22 = vrot.slane %v435_v18, 7 }
  0xa3   : > { %v458_v23 = vrot.slane %v438_v17, 1  ;;  %v459_v24 = vrot.slane %v435_v18, 1  ;;  %v470_v33 = vmul.f32 0.75, %v434_v16  ;;  %v471_v39 = vmul.f32 0.75, %v438_v17 }
  0xa4   : > { %v453_v25 = vsel %vm452_vm2, %v434_v16, %v444_v19  ;;  %v466_v26 = vsel %vm465_vm3, %v457_v20, %v434_v16  ;;  %v454_v27 = vsel %vm452_vm2, %v438_v17, %v445_v21  ;;  %v455_v28 = vsel %vm452_vm2, %v435_v18, %v446_v22 }
  0xa5   : > { %v467_v29 = vsel %vm465_vm3, %v458_v23, %v438_v17  ;;  %v468_v30 = vsel %vm465_vm3, %v459_v24, %v435_v18  ;;  %v474_v31 = vmul.f32 0.25, %v453_v25  ;;  %v482_v32 = vmul.f32 0.25, %v466_v26 }
  0xa6   : > { %v475_v34 = vmul.f32 0.25, %v454_v27  ;;  %v476_v36 = vmul.f32 0.25, %v455_v28  ;;  %v483_v37 = vmul.f32 0.25, %v467_v29  ;;  %v484_v38 = vmul.f32 0.25, %v468_v30 }
  0xa7   : > { %v1217_v40 = vadd.f32 %v474_v31, %v470_v33  ;;  %v472_v42 = vmul.f32 0.75, %v435_v18  ;;  %v486_v43 = vadd.f32 %v482_v32, %v470_v33  ;;  %v1236_v51 = vmul.f32 0.25, %v427_v41 }
  0xa8   : > { %v1219_v44 = vadd.f32 %v475_v34, %v471_v39  ;;  %v1232_v49 = vadd.f32 %v483_v37, %v471_v39 }
  0xa9   : > { %v1230_v48 = vadd.f32 %v476_v36, %v472_v42  ;;  %v1234_v50 = vadd.f32 %v484_v38, %v472_v42  ;;  %v494_v52 = vrot.slane %v1217_v40, 1  ;;  %v495_v53 = vrot.slane %v1217_v40, 2 }
  0xaa   : > { %v496_v54 = vrot.slane %v1217_v40, 3  ;;  %v497_v55 = vrot.slane %v1217_v40, 4  ;;  %v498_v56 = vrot.slane %v1217_v40, 5  ;;  %v499_v57 = vrot.slane %v1217_v40, 6 }
  0xab   : > { %v554_v58 = vrot.slane %v486_v43, 1  ;;  %v555_v59 = vrot.slane %v486_v43, 2  ;;  %v500_v60 = vrot.slane %v1217_v40, 7  ;;  %v501_v61 = vrot.slane %v1219_v44, 1 }
  0xac   : > { %v502_v62 = vrot.slane %v1219_v44, 2  ;;  %v556_v63 = vrot.slane %v486_v43, 3  ;;  %v503_v0 = vrot.slane %v1219_v44, 3  ;;  %v504_v1 = vrot.slane %v1219_v44, 4 }
  0xad   : > { %v505_v2 = vrot.slane %v1219_v44, 5  ;;  %v557_v3 = vrot.slane %v486_v43, 4  ;;  %v506_v4 = vrot.slane %v1219_v44, 6  ;;  %v507_v5 = vrot.slane %v1219_v44, 7 }
  0xae   : > { %v508_v6 = vrot.slane %v1230_v48, 1  ;;  %v558_v7 = vrot.slane %v486_v43, 5  ;;  %v559_v8 = vrot.slane %v486_v43, 6  ;;  %v582_v9 = vperm.slane %v486_v43, 0 }
  0xaf   : > { %v583_v10 = vperm.slane %v554_v58, 0  ;;  %v584_v11 = vperm.slane %v555_v59, 0  ;;  %v509_v12 = vrot.slane %v1230_v48, 2  ;;  %v510_v13 = vrot.slane %v1230_v48, 3 }
  0xb0   : > { %v560_v15 = vrot.slane %v486_v43, 7  ;;  %v585_v16 = vperm.slane %v556_v63, 0  ;;  %v511_v17 = vrot.slane %v1230_v48, 4  ;;  %v512_v18 = vrot.slane %v1230_v48, 5 }
  0xb1   : > { %v513_v19 = vrot.slane %v1230_v48, 6  ;;  %v586_v20 = vperm.slane %v557_v3, 0  ;;  %v514_v21 = vrot.slane %v1230_v48, 7  ;;  %v561_v22 = vrot.slane %v1232_v49, 1 }
  0xb2   : > { %v562_v23 = vrot.slane %v1232_v49, 2  ;;  %v587_v24 = vperm.slane %v558_v7, 0  ;;  %v588_v25 = vperm.slane %v559_v8, 0  ;;  %v646_v26 = vsel %vm452_vm2, %v1217_v40, %v582_v9 }
  0xb3   : > { %v647_v27 = vsel %vm452_vm2, %v494_v52, %v583_v10  ;;  %v648_v28 = vsel %vm452_vm2, %v495_v53, %v584_v11  ;;  %v563_v29 = vrot.slane %v1232_v49, 3  ;;  %v564_v30 = vrot.slane %v1232_v49, 4 }
  0xb4   : > { %v589_v31 = vperm.slane %v560_v15, 0  ;;  %v649_v32 = vsel %vm452_vm2, %v496_v54, %v585_v16  ;;  %v565_v33 = vrot.slane %v1232_v49, 5  ;;  %v566_v34 = vrot.slane %v1232_v49, 6 }
  0xb5   : > { %v567_v36 = vrot.slane %v1232_v49, 7  ;;  %v650_v37 = vsel %vm452_vm2, %v497_v55, %v586_v20  ;;  %v651_v38 = vsel %vm452_vm2, %v498_v56, %v587_v24  ;;  %v688_v39 = vadd.f32 %v1215_v35, %v646_v26 }
  0xb6   : > { %v689_v40 = vadd.f32 %v1222_v45, %v647_v27  ;;  %v690_v41 = vadd.f32 %v1225_v46, %v648_v28  ;;  %v568_v42 = vrot.slane %v1234_v50, 1  ;;  %v569_v43 = vrot.slane %v1234_v50, 2 }
  0xb7   : > { %v652_v52 = vsel %vm452_vm2, %v499_v57, %v588_v25  ;;  %v691_v53 = vadd.f32 %v1228_v47, %v649_v32  ;;  %v570_v54 = vrot.slane %v1234_v50, 3  ;;  %v571_v55 = vrot.slane %v1234_v50, 4 }
  0xb8   : > { %v653_v56 = vsel %vm452_vm2, %v500_v60, %v589_v31  ;;  %v692_v58 = vadd.f32 %v1215_v35, %v650_v37  ;;  %v572_v59 = vrot.slane %v1234_v50, 5  ;;  %v573_v63 = vrot.slane %v1234_v50, 6 }
  0xb9   : > { %v590_v3 = vperm.slane %v1232_v49, 0  ;;  %v693_v7 = vadd.f32 %v1222_v45, %v651_v38  ;;  %v694_v57 = vadd.f32 %v1225_v46, %v652_v52  ;;  %v720_v8 = vmax.f32 %v688_v39, 0.0 }
  0xba   : > { %v721_v9 = vmax.f32 %v689_v40, 0.0  ;;  %v722_v10 = vmax.f32 %v690_v41, 0.0  ;;  %v574_v60 = vrot.slane %v1234_v50, 7  ;;  %v591_v11 = vperm.slane %v561_v22, 0 }
  0xbb   : > { %v695_v15 = vadd.f32 %v1228_v47, %v653_v56  ;;  %v723_v16 = vmax.f32 %v691_v53, 0.0  ;;  %v592_v49 = vperm.slane %v562_v23, 0  ;;  %v593_v20 = vperm.slane %v563_v29, 0  ;;  %784 = vst [vmem:[#allocation1] ss:$4 sm:$0xff] %v720_v8 }
  0xbc   : > { %v594_v24 = vperm.slane %v564_v30, 0  ;;  %v724_v25 = vmax.f32 %v692_v58, 0.0  ;;  %v595_v26 = vperm.slane %v565_v33, 0  ;;  %v596_v27 = vperm.slane %v566_v34, 0  ;;  %786 = vst [vmem:[#allocation1 + $0x1] ss:$4 sm:$0xff] %v721_v9 }
  0xbd   : > { %v597_v28 = vperm.slane %v567_v36, 0  ;;  %v725_v31 = vmax.f32 %v693_v7, 0.0  ;;  %v598_v32 = vperm.slane %v1234_v50, 0  ;;  %v599_v37 = vperm.slane %v568_v42, 0  ;;  %788 = vst [vmem:[#allocation1 + $0x2] ss:$4 sm:$0xff] %v722_v10 }
  0xbe   : > { %v654_v22 = vsel %vm452_vm2, %v1219_v44, %v590_v3  ;;  %v726_v38 = vmax.f32 %v694_v57, 0.0  ;;  %v600_v23 = vperm.slane %v569_v43, 0  ;;  %v601_v29 = vperm.slane %v570_v54, 0  ;;  %790 = vst [vmem:[#allocation1 + $0x3] ss:$4 sm:$0xff] %v723_v16 }
  0xbf   : > { %v655_v30 = vsel %vm452_vm2, %v501_v61, %v591_v11  ;;  %v727_v33 = vmax.f32 %v695_v15, 0.0  ;;  %v602_v50 = vperm.slane %v571_v55, 0  ;;  %v603_v34 = vperm.slane %v572_v59, 0  ;;  %792 = vst [vmem:[#allocation1 + $0x20] ss:$4 sm:$0xff] %v724_v25 }
  0xc0   : > { %v656_v36 = vsel %vm452_vm2, %v502_v62, %v592_v49  ;;  %v439_v39 = vadd.f32 %v1236_v51, %v1203_v14  ;;  %v604_v40 = vperm.slane %v573_v63, 0  ;;  %v605_v41 = vperm.slane %v574_v60, 0  ;;  %794 = vst [vmem:[#allocation1 + $0x21] ss:$4 sm:$0xff] %v725_v31 }
  0xc1   : > { %v657_v61 = vsel %vm452_vm2, %v503_v0, %v593_v20  ;;  %v696_v42 = vadd.f32 %v1215_v35, %v654_v22  ;;  %v658_v43 = vsel %vm452_vm2, %v504_v1, %v594_v24  ;;  %v697_v52 = vadd.f32 %v1222_v45, %v655_v30  ;;  %796 = vst [vmem:[#allocation1 + $0x22] ss:$4 sm:$0xff] %v726_v38 }
  0xc2   : > { %v447_v62 = vrot.slane %v439_v39, 7  ;;  %v460_v53 = vrot.slane %v439_v39, 1  ;;  %v659_v14 = vsel %vm452_vm2, %v505_v2, %v595_v26  ;;  %v660_v51 = vsel %vm452_vm2, %v506_v4, %v596_v27  ;;  %798 = vst [vmem:[#allocation1 + $0x23] ss:$4 sm:$0xff] %v727_v33 }
  0xc3   : > { %v661_v0 = vsel %vm452_vm2, %v507_v5, %v597_v28  ;;  %v698_v1 = vadd.f32 %v1225_v46, %v656_v36  ;;  %v662_v54 = vsel %vm452_vm2, %v1230_v48, %v598_v32  ;;  %v663_v55 = vsel %vm452_vm2, %v508_v6, %v599_v37 }
  0xc4   : > { %v699_v2 = vadd.f32 %v1228_v47, %v657_v61  ;;  %v469_v56 = vsel %vm465_vm3, %v460_v53, %v439_v39  ;;  %v700_v4 = vadd.f32 %v1215_v35, %v658_v43  ;;  %v728_v58 = vmax.f32 %v696_v42, 0.0 }
  0xc5   : > { %v473_v44 = vmul.f32 0.75, %v439_v39  ;;  %v485_v59 = vmul.f32 0.25, %v469_v56  ;;  %v664_v5 = vsel %vm452_vm2, %v509_v12, %v600_v23  ;;  %v701_v63 = vadd.f32 %v1222_v45, %v659_v14  ;;  %v799_v6 = vld.sshfl [vmem:[#allocation1] sm:$0xff pattern:$0x73625140] }
  0xc6   : > { %v729_v3 = vmax.f32 %v697_v52, 0.0  ;;  %v456_v7 = vsel %vm452_vm2, %v439_v39, %v447_v62  ;;  %v665_v57 = vsel %vm452_vm2, %v510_v13, %v601_v29  ;;  %v666_v8 = vsel %vm452_vm2, %v511_v17, %v602_v50  ;;  %801 = vst [vmem:[#allocation1] ss:$4 sm:$0xff] %v728_v58 }
  0xc7   : > { %v702_v9 = vadd.f32 %v1225_v46, %v660_v51  ;;  %v730_v10 = vmax.f32 %v698_v1, 0.0  ;;  %v667_v12 = vsel %vm452_vm2, %v512_v18, %v603_v34  ;;  %v668_v60 = vsel %vm452_vm2, %v513_v19, %v604_v40 }
  0xc8   : > { %v703_v11 = vadd.f32 %v1228_v47, %v661_v0  ;;  %v731_v15 = vmax.f32 %v699_v2, 0.0  ;;  %802 = vst [vmem:[#allocation1 + $0x1] ss:$4 sm:$0xff] %v729_v3  ;;  %v669_v13 = vsel %vm452_vm2, %v514_v21, %v605_v41  ;;  %v732_v17 = vmax.f32 %v700_v4, 0.0 }
  0xc9   : > { %803 = vst [vmem:[#allocation1 + $0x2] ss:$4 sm:$0xff] %v730_v10  ;;  %v477_v16 = vmul.f32 0.25, %v456_v7  ;;  %v1368_v49 = vadd.f32 %v485_v59, %v473_v44  ;;  %v704_v18 = vadd.f32 %v1215_v35, %v662_v54  ;;  %v705_v20 = vadd.f32 %v1222_v45, %v663_v55  ;;  %v1373_v25 = vld.sshfl [vmem:[#allocation1 + $0x20] sm:$0xff pattern:$0x73625140] }
  0xca   : > { %v706_v19 = vadd.f32 %v1225_v46, %v664_v5  ;;  %v733_v24 = vmax.f32 %v701_v63, 0.0  ;;  %804 = vst [vmem:[#allocation1 + $0x3] ss:$4 sm:$0xff] %v731_v15  ;;  %v707_v26 = vadd.f32 %v1228_v47, %v665_v57  ;;  %v708_v48 = vadd.f32 %v1215_v35, %v666_v8 }
  0xcb   : > { %v734_v21 = vmax.f32 %v702_v9, 0.0  ;;  %805 = vst [vmem:[#allocation1 + $0x20] ss:$4 sm:$0xff] %v732_v17  ;;  %v839_v27 = vpack.c.bf16 %v799_v6, %v799_v6  ;;  %v709_v28 = vadd.f32 %v1222_v45, %v667_v12  ;;  %v710_v31 = vadd.f32 %v1225_v46, %v668_v60 }
  0xcc   : > { %v735_v32 = vmax.f32 %v703_v11, 0.0  ;;  %806 = vst [vmem:[#allocation1 + $0x21] ss:$4 sm:$0xff] %v733_v24  ;;  %v481_v37 = vadd.f32 %v477_v16, %v473_v44  ;;  %v575_v22 = vrot.slane %v1368_v49, 1  ;;  %v711_v38 = vadd.f32 %v1228_v47, %v669_v13 }
  0xcd   : > { %807 = vst [vmem:[#allocation1 + $0x22] ss:$4 sm:$0xff] %v734_v21  ;;  %v736_v23 = vmax.f32 %v704_v18, 0.0  ;;  %v737_v29 = vmax.f32 %v705_v20, 0.0  ;;  %v576_v30 = vrot.slane %v1368_v49, 2  ;;  %v738_v33 = vmax.f32 %v706_v19, 0.0 }
  0xce   : > { %808 = vst [vmem:[#allocation1 + $0x23] ss:$4 sm:$0xff] %v735_v32  ;;  %v739_v50 = vmax.f32 %v707_v26, 0.0  ;;  %v740_v34 = vmax.f32 %v708_v48, 0.0  ;;  %v577_v36 = vrot.slane %v1368_v49, 3  ;;  %v741_v39 = vmax.f32 %v709_v28, 0.0 }
  0xcf   : > { %848 = vst.msk [vmem:[%s1380_s12] sm:$0xf] %vm847_vm4, %v839_v27  ;;  %v742_v40 = vmax.f32 %v710_v31, 0.0  ;;  %v578_v41 = vrot.slane %v1368_v49, 4  ;;  %v606_v61 = vperm.slane %v1368_v49, 0  ;;  %v515_v43 = vrot.slane %v481_v37, 1 }
  0xd0   : > { %v579_v52 = vrot.slane %v1368_v49, 5  ;;  %v607_v62 = vperm.slane %v575_v22, 0  ;;  %v743_v53 = vmax.f32 %v711_v38, 0.0  ;;  %v516_v14 = vrot.slane %v481_v37, 2 }
  0xd1   : > { %v809_v42 = vld.sshfl [vmem:[#allocation1] sm:$0xff pattern:$0x73625140]  ;;  %v580_v51 = vrot.slane %v1368_v49, 6  ;;  %v608_v0 = vperm.slane %v576_v30, 0  ;;  %v517_v1 = vrot.slane %v481_v37, 3  ;;  %v670_v44 = vsel %vm452_vm2, %v481_v37, %v606_v61 }
  0xd2   : > { %811 = vst [vmem:[#allocation1] ss:$4 sm:$0xff] %v736_v23  ;;  %v518_v54 = vrot.slane %v481_v37, 4  ;;  %v581_v55 = vrot.slane %v1368_v49, 7  ;;  %v609_v2 = vperm.slane %v577_v36, 0  ;;  %v519_v56 = vrot.slane %v481_v37, 5 }
  0xd3   : > { %812 = vst [vmem:[#allocation1 + $0x1] ss:$4 sm:$0xff] %v737_v29  ;;  %v520_v4 = vrot.slane %v481_v37, 6  ;;  %v610_v58 = vperm.slane %v578_v41, 0  ;;  %v611_v5 = vperm.slane %v579_v52, 0  ;;  %v671_v63 = vsel %vm452_vm2, %v515_v43, %v607_v62 }
  0xd4   : > { %813 = vst [vmem:[#allocation1 + $0x2] ss:$4 sm:$0xff] %v738_v33  ;;  %v521_v3 = vrot.slane %v481_v37, 7  ;;  %v612_v6 = vperm.slane %v580_v51, 0  ;;  %v672_v7 = vsel %vm452_vm2, %v516_v14, %v608_v0  ;;  %v840_v57 = vpack.c.bf16 %v1373_v25, %v1373_v25 }
  0xd5   : > { %v810_v59 = vld.sshfl [vmem:[#allocation1 + $0x20] sm:$0xff pattern:$0x73625140]  ;;  %814 = vst [vmem:[#allocation1 + $0x3] ss:$4 sm:$0xff] %v739_v50  ;;  %v841_v8 = vpack.c.bf16 %v809_v42, %v809_v42  ;;  %v613_v9 = vperm.slane %v581_v55, 0  ;;  %v673_v10 = vsel %vm452_vm2, %v517_v1, %v609_v2  ;;  %v712_v12 = vadd.f32 %v1215_v35, %v670_v44 }
  0xd6   : > { %815 = vst [vmem:[#allocation1 + $0x20] ss:$4 sm:$0xff] %v740_v34  ;;  %v842_v60 = vpack.c.bf16 %v810_v59, %v810_v59  ;;  %v674_v11 = vsel %vm452_vm2, %v518_v54, %v610_v58  ;;  %v713_v15 = vadd.f32 %v1222_v45, %v671_v63  ;;  %v675_v13 = vsel %vm452_vm2, %v519_v56, %v611_v5 }
  0xd7   : > { %816 = vst [vmem:[#allocation1 + $0x21] ss:$4 sm:$0xff] %v741_v39  ;;  %v714_v17 = vadd.f32 %v1225_v46, %v672_v7  ;;  %v676_v16 = vsel %vm452_vm2, %v520_v4, %v612_v6  ;;  %v715_v49 = vadd.f32 %v1228_v47, %v673_v10  ;;  %v677_v18 = vsel %vm452_vm2, %v521_v3, %v613_v9 }
  0xd8   : > { %817 = vst [vmem:[#allocation1 + $0x22] ss:$4 sm:$0xff] %v742_v40  ;;  %v716_v20 = vadd.f32 %v1215_v35, %v674_v11  ;;  %v744_v19 = vmax.f32 %v712_v12, 0.0  ;;  %v717_v24 = vadd.f32 %v1222_v45, %v675_v13  ;;  %v745_v25 = vmax.f32 %v713_v15, 0.0 }
  0xd9   : > { %818 = vst [vmem:[#allocation1 + $0x23] ss:$4 sm:$0xff] %v743_v53  ;;  %v718_v48 = vadd.f32 %v1225_v46, %v676_v16  ;;  %v746_v21 = vmax.f32 %v714_v17, 0.0  ;;  %v719_v27 = vadd.f32 %v1228_v47, %v677_v18  ;;  %v747_v28 = vmax.f32 %v715_v49, 0.0 }
  0xda   : > { %849 = vst.msk [vmem:[%s1380_s12 + $0x4] sm:$0xf] %vm847_vm4, %v840_v57  ;;  %v748_v35 = vmax.f32 %v716_v20, 0.0  ;;  %v749_v31 = vmax.f32 %v717_v24, 0.0 }
  0xdb   : > { %850 = vst.msk [vmem:[%s1380_s12 + $0x8] sm:$0xf] %vm847_vm4, %v841_v8  ;;  %v750_v45 = vmax.f32 %v718_v48, 0.0  ;;  %v751_v22 = vmax.f32 %v719_v27, 0.0 }
  0xdc   : > { %v819_v26 = vld.sshfl [vmem:[#allocation1] sm:$0xff pattern:$0x73625140]  ;;  %851 = vst.msk [vmem:[%s1380_s12 + $0xc] sm:$0xf] %vm847_vm4, %v842_v60 }
  0xdd   : > { %821 = vst [vmem:[#allocation1] ss:$4 sm:$0xff] %v744_v19  ;;  %v843_v37 = vpack.c.bf16 %v819_v26, %v819_v26 }
  0xde   : > { %822 = vst [vmem:[#allocation1 + $0x1] ss:$4 sm:$0xff] %v745_v25 }
  0xdf   : > { %823 = vst [vmem:[#allocation1 + $0x2] ss:$4 sm:$0xff] %v746_v21 }
  0xe0   : > { %v820_v32 = vld.sshfl [vmem:[#allocation1 + $0x20] sm:$0xff pattern:$0x73625140]  ;;  %824 = vst [vmem:[#allocation1 + $0x3] ss:$4 sm:$0xff] %v747_v28 }
  0xe1   : > { %825 = vst [vmem:[#allocation1 + $0x20] ss:$4 sm:$0xff] %v748_v35  ;;  %v844_v46 = vpack.c.bf16 %v820_v32, %v820_v32 }
  0xe2   : > { %826 = vst [vmem:[#allocation1 + $0x21] ss:$4 sm:$0xff] %v749_v31 }
  0xe3   : > { %827 = vst [vmem:[#allocation1 + $0x22] ss:$4 sm:$0xff] %v750_v45 }
  0xe4   : > { %828 = vst [vmem:[#allocation1 + $0x23] ss:$4 sm:$0xff] %v751_v22 }
  0xe5   : > { %852 = vst.msk [vmem:[%s1380_s12 + $0x10] sm:$0xf] %vm847_vm4, %v843_v37 }
  0xe6   : > { %853 = vst.msk [vmem:[%s1380_s12 + $0x14] sm:$0xf] %vm847_vm4, %v844_v46 }
  0xe7   : > { %v829_v47 = vld.sshfl [vmem:[#allocation1] sm:$0xff pattern:$0x73625140] }
  0xe8   : > { %v845_v38 = vpack.c.bf16 %v829_v47, %v829_v47 }
  0xea   : > { %854 = vst.msk [vmem:[%s1380_s12 + $0x18] sm:$0xf] %vm847_vm4, %v845_v38 }
  0xeb   : > { %v830_v23 = vld.sshfl [vmem:[#allocation1 + $0x20] sm:$0xff pattern:$0x73625140] }
  0xec   : > { %v846_v29 = vpack.c.bf16 %v830_v23, %v830_v23 }
  0xee   : > { %855 = vst.msk [vmem:[%s1380_s12 + $0x1c] sm:$0xf] %vm847_vm4, %v846_v29 }
  0xef PF: > { %s15_s22 = sadd.s32 1, %s1123_s22   ;;  %s1449_s18 = smov %s1115_s20 }
  0xf0   : > { %p12_p11 = scmp.ge.s32.totalorder %s15_s22, 10   ;;  %s1450_s19 = smov %s1119_s21 }
  0xf1   : > { %s1451_s20 = smov %s1454_s23  ;;  %s1452_s21 = smov %s1458_s24 }
  0xf2   :  { %14 = sbr.rel (!%p12_p11) target bundleno = 3 (0x3), region = 83 }

// kernel: up_conv_block_forward.4
= control target key start
LH: loop header
LB: loop body
LE: loop exit
PB: predicated region body
PF: predicated region fallthrough
CT: control target
= control target key end

     0   :  { %s1906_s30 = smov 0   ;;  %s1908_s10 = smov 0   ;;  %s2429_s0 = inlined_call_operand.vmem [shape: bf16[2,16,16,4], index: 0, kind: input, shape index: {}, may-alias: {0,1,2}]   ;;  %s2430_s1 = inlined_call_operand.vmem [shape: bf16[2,16,16,4], index: 1, kind: input, shape index: {}, may-alias: {0,1,2}]   ;;  %s2431_s2 = inlined_call_operand.vmem [shape: bf16[2,16,16,4], index: 2, kind: input, shape index: {}, may-alias: {0,1,2}]   ;;  %s2432_s3 = inlined_call_operand.vmem [shape: bf16[2,16,16,4], index: 3, kind: input, shape index: {}, may-alias: {3,4,5}]   ;;  %s2433_s4 = inlined_call_operand.vmem [shape: bf16[2,16,16,4], index: 4, kind: input, shape index: {}, may-alias: {3,4,5}]   ;;  %s2434_s5 = inlined_call_operand.vmem [shape: bf16[2,16,16,4], index: 5, kind: input, shape index: {}, may-alias: {3,4,5}]   ;;  %s2435_s6 = inlined_call_operand.vmem [shape: bf16[3,12,4], index: 6, kind: input, shape index: {}]   ;;  %s2436_s7 = inlined_call_operand.vmem [shape: bf16[3,12,4], index: 7, kind: input, shape index: {}]   ;;  %s2437_s8 = inlined_call_operand.vmem [shape: f32[1,4], index: 8, kind: input, shape index: {}]   ;;  %s2438_s9 = inlined_call_operand.vmem [shape: bf16[2,16,16,4], index: 9, kind: output, shape index: {}]  }
   0x1   :  { %s1910_s11 = smov 0   ;;  %s1912_s12 = smov 0  }
   0x2   :  { %s1914_s13 = smov 0  }
   0x3 LB: > { %s28_s14 = sadd.s32 1, %s1844_s11  ;;  %s31_s15 = sadd.s32 1, %s1848_s12  ;;  %s1852_s13 = sphi %s1914_s13, %s19_s13   ;;  %s1848_s12 = sphi %s1912_s12, %s2451_s12   ;;  %s1844_s11 = sphi %s1910_s11, %s2450_s11   ;;  %s1840_s10 = sphi %s1908_s10, %s2449_s10   ;;  %s1836_s30 = sphi %s1906_s30, %s2448_s30  }
   0x4   : > { %p29_p0 = scmp.ge.s32.totalorder %s28_s14, 4  ;;  %p1602_p1 = scmp.ge.s32.totalorder %s1852_s13, 1 }
   0x5   : > { %p455_p2 = scmp.lt.s32.totalorder %s1852_s13, 9 }
   0x6   : > { %s2453_s14 = smov (%p29_p0, %s28_s14), 0  ;;  %s2455_s15 = smov (!%p29_p0, %s31_s15), %s1848_s12 }
   0x7   : > { %p456_p3 = pnand %p1602_p1, %p455_p2  ;;  %p33_p4 = scmp.ge.s32.totalorder %s2455_s15, 2 }
   0x8   : > { %s1939_s16 = sshll.u32 (!%p456_p3), %s1836_s30, 2  ;;  %p564_p5 = scmp.lt.s32.totalorder (!%p456_p3), %s1840_s10, 1 }
   0x9   : > { %s2457_s15 = smov (%p33_p4, %s2455_s15), 0  ;;  %459 = sbr.rel (%p456_p3) target bundleno = 381 (0x17d), region = 56 }
   0xa   : > { %p566_p6 = scmp.lt.s32.totalorder (!%p456_p3), %s1939_s16, 15  ;;  %s1608_s20 = sadd.s32 (!%p456_p3), 4294967295, %s1939_s16 }
   0xb   : > { %p576_p7 = scmp.gt.s32.totalorder (!%p456_p3), %s1608_s20, 0  ;;  %p1609_p8 = scmp.lt.s32.totalorder (!%p456_p3), %s1608_s20, 15 }
   0xc   : > { %p673_p9 = scmp.eq.s32.totalorder (!%p456_p3), %s1836_s30, 0  ;;  %s1854_s28 = smov (!%p456_p3), 4  }
   0xd   : > { %s1750_s29 = sadd.s32 (!%p456_p3), 4, %s1939_s16  ;;  %p681_p11 = scmp.eq.s32.totalorder (!%p456_p3), %s1836_s30, 3 }
   0xe   : > { %s2459_s10 = smov (!%p564_p5, %s1840_s10), 1  ;;  %vm794_vm0 = vcmask 1047552   ;;  %vm795_vm1 = vsmask.f32 7424  ;;  %p2002_p10 = scmp.lt.s32.totalorder %s1750_s29, 15  ;;  %vm884_vm5 = vcmask 1045504  }
   0xf   : > { %s567_s17 = scalar_select %p566_p6, %s1939_s16, 15  ;;  %vm1985_vm2 = vmand %vm794_vm0, %vm795_vm1  ;;  %vm767_vm6 = vcmask 1040384   ;;  %vm768_vm7 = vsmask.f32 256  ;;  %v1711_v12 = vld [vmem:[%s2436_s7] sm:$0xf] }
  0x10   : > { %s1943_s18 = sshll.u32 %s2459_s10, 5  ;;  %s2463_s29 = smov (!%p2002_p10, %s1750_s29), 15  ;;  %vm2207_vm8 = vmand %vm767_vm6, %vm768_vm7  ;;  %vm833_vm9 = vcmask 31744   ;;  %vm852_vm10 = vcmask 64512   ;;  %vm875_vm11 = vcmask 97280   ;;  %vm1373_vm12 = vcmask 27648  }
  0x11   : > { %s1604_s19 = sshll.u32 %s567_s17, 1  ;;  %s2465_s29 = smov (!%p2002_p10, %s2463_s29), 15 }
  0x12   : > { %s570_s21 = sadd.s32 %s1943_s18, %s1604_s19 }
  0x13   : > { %s1947_s22 = sshll.u32 %s570_s21, 2 }
  0x14   : > { %s1953_s25 = scalar_lea.vmem %s2429_s0, %s1947_s22 }
  0x15   : > { %v1957_v0 = vld [vmem:[%s1953_s25 + $0x10] sm:$0xff]  ;;  %v1960_v1 = vld [vmem:[%s1953_s25 + $0x8] sm:$0xff]  ;;  %v1963_v2 = vld [vmem:[%s1953_s25] sm:$0xff]  ;;  %s577_s26 = scalar_select %p576_p7, %s1608_s20, 0 }
  0x16   : > { %s676_s27 = scalar_select %p673_p9, 1, 0  ;;  %809 = vrot.lane.b32.xlu0 %v1957_v0, %s1854_s28  ;;  %807 = vrot.lane.b32.xlu1 %v1960_v1, %s1854_s28  ;;  %v741_v3 = vshrl.u32 %v1957_v0, 16  ;;  %v744_v4 = vshll.u32 %v1957_v0, 16  ;;  %v734_v5 = vshrl.u32 %v1960_v1, 16  ;;  %v737_v6 = vshll.u32 %v1960_v1, 16 }
  0x17   : > { %s2461_s26 = smov (!%p1609_p8, %s577_s26), 15  ;;  %805 = vrot.lane.b32.xlu2 %v1963_v2, %s1854_s28  ;;  %v727_v8 = vshrl.u32 %v1963_v2, 16  ;;  %v730_v9 = vshll.u32 %v1963_v2, 16  ;;  %v2012_v18 = vld [vmem:[%s1953_s25 + $0x18] sm:$0xff]  ;;  %s1855_s25 = smov 8  }
  0x18   : > { %v677_v7 = vstv %s676_s27  ;;  %v782_v10 = vrot.slane %v744_v4, 1  ;;  %v780_v11 = vrot.slane %v737_v6, 1  ;;  %s1614_s10 = sshll.u32 %s2461_s26, 1  ;;  %v751_v31 = vshll.u32 %v2012_v18, 16  ;;  %s1621_s20 = sshll.u32 %s2465_s29, 1 }
  0x19   : > { %s584_s17 = sadd.s32 %s1614_s10, %s1943_s18  ;;  %v778_v13 = vrot.slane %v730_v9, 1  ;;  %vm1996_vm3 = vcmp.eq.s32.totalorder %v677_v7, 1  ;;  %v748_v38 = vshrl.u32 %v2012_v18, 16  ;;  %s601_s29 = sadd.s32 %s1621_s20, %s1943_s18  ;;  %v1759_v2 = vld [vmem:[%s2435_s6] sm:$0x30] }
  0x1a   : > { %v783_v14 = vor.u32 %v782_v10, %v741_v3  ;;  %v781_v15 = vor.u32 %v780_v11, %v734_v5  ;;  %s1616_s19 = sshll.u32 %s584_s17, 2  ;;  %v784_v39 = vrot.slane %v751_v31, 1  ;;  %s2086_s21 = sshll.u32 %s601_s29, 2 }
  0x1b   : > { %s586_s24 = scalar_lea.vmem %s2430_s1, %s1616_s19  ;;  %v779_v17 = vor.u32 %v778_v13, %v727_v8  ;;  %s631_s10 = scalar_lea.vmem %s2433_s4, %s1616_s19 }
  0x1c   : > { %v800_v19 = vsel %vm1985_vm2, %v783_v14, 0  ;;  %v799_v20 = vsel %vm1985_vm2, %v781_v15, 0  ;;  %v674_v21 = vld [vmem:[%s586_s24] sm:$0xf]  ;;  %v675_v22 = vld [vmem:[%s586_s24 + $0x4] sm:$0xf]  ;;  %s2054_s19 = scalar_lea.vmem %s2432_s3, %s1947_s22  ;;  %v785_v46 = vor.u32 %v784_v39, %v748_v38  ;;  %s603_s24 = scalar_lea.vmem %s2431_s2, %s2086_s21 }
  0x1d   : > { %v679_v23 = vsel %vm1996_vm3, 0, %v674_v21  ;;  %v680_v24 = vsel %vm1996_vm3, 0, %v675_v22  ;;  %v798_v25 = vsel %vm1985_vm2, %v779_v17, 0  ;;  %v1014_v26 = vld [vmem:[%s631_s10] sm:$0xf]  ;;  %v2084_v52 = vld [vmem:[%s2054_s19 + $0x8] sm:$0xff] }
  0x1e   : > { %827 = vrot.lane.b32.xlu0 %v800_v19, %s1855_s25  ;;  %825 = vrot.lane.b32.xlu1 %v799_v20, %s1855_s25  ;;  %v701_v27 = vunpack.c.l.b16 %v679_v23  ;;  %v702_v28 = vunpack.c.l.b16 %v680_v24  ;;  %v1015_v29 = vld [vmem:[%s631_s10 + $0x4] sm:$0xf]  ;;  %v1016_v30 = vsel %vm1996_vm3, 0, %v1014_v26  ;;  %s684_s30 = scalar_select %p681_p11, 1, 0  ;;  %v801_v51 = vsel %vm1985_vm2, %v785_v46, 0 }
  0x1f   : > { %823 = vrot.lane.b32.xlu2 %v798_v25, %s1855_s25  ;;  %v1017_v32 = vsel %vm1996_vm3, 0, %v1015_v29  ;;  %v1034_v33 = vunpack.c.l.b16 %v1016_v30  ;;  %v2065_v45 = vld [vmem:[%s2054_s19] sm:$0xff]  ;;  %v2095_v56 = vld [vmem:[%s2054_s19 + $0x10] sm:$0xff]  ;;  %v1070_v58 = vshll.u32 %v2084_v52, 16  ;;  %v1067_v7 = vshrl.u32 %v2084_v52, 16  ;;  %v2127_v17 = vld [vmem:[%s2054_s19 + $0x18] sm:$0xff]  ;;  %s648_s10 = scalar_lea.vmem %s2434_s5, %s2086_s21 }
  0x20   : > { %v2039_v34 = vpack.c.b16 %v702_v28, %v701_v27  ;;  %v1035_v35 = vunpack.c.l.b16 %v1017_v32  ;;  %v1063_v50 = vshll.u32 %v2065_v45, 16  ;;  %v1060_v54 = vshrl.u32 %v2065_v45, 16  ;;  %v682_v60 = vld [vmem:[%s603_s24] sm:$0xf]  ;;  %v683_v61 = vld [vmem:[%s603_s24 + $0x4] sm:$0xf] }
  0x21   : > { %v685_v57 = vstv %s684_s30  ;;  %v1077_v59 = vshll.u32 %v2095_v56, 16  ;;  %v1110_v10 = vrot.slane %v1070_v58, 1  ;;  %v1074_v14 = vshrl.u32 %v2095_v56, 16  ;;  %v1019_v39 = vld [vmem:[%s648_s10 + $0x4] sm:$0xf] }
  0x22   : > { %v720_v36 = vshrl.u32 %v2039_v34, 16  ;;  %v723_v37 = vshll.u32 %v2039_v34, 16  ;;  %v2048_v40 = vpack.c.b16 %v1035_v35, %v1034_v33  ;;  %v1108_v55 = vrot.slane %v1063_v50, 1  ;;  %v1018_v35 = vld [vmem:[%s648_s10] sm:$0xf]  ;;  %s2381_s10 = scalar_lea.vmem %s2438_s9, %s1947_s22 }
  0x23   : > { %vm2106_vm4 = vcmp.eq.s32.totalorder %v685_v57, 1  ;;  %v1112_v15 = vrot.slane %v1077_v59, 1  ;;  %v1111_v19 = vor.u32 %v1110_v10, %v1067_v7  ;;  %v1084_v23 = vshll.u32 %v2127_v17, 16 }
  0x24   : > { %v776_v41 = vrot.slane %v723_v37, 1  ;;  %v1053_v42 = vshrl.u32 %v2048_v40, 16  ;;  %v1056_v43 = vshll.u32 %v2048_v40, 16  ;;  %v1109_v63 = vor.u32 %v1108_v55, %v1060_v54 }
  0x25   : > { %v687_v11 = vsel %vm2106_vm4, 0, %v682_v60  ;;  %v688_v13 = vsel %vm2106_vm4, 0, %v683_v61  ;;  %v1113_v22 = vor.u32 %v1112_v15, %v1074_v14  ;;  %v1126_v24 = vsel %vm1985_vm2, %v1111_v19, 0  ;;  %v1669_v60 = vld [vmem:[%s2435_s6 + $0x8] sm:$0xf] }
  0x26   : > { %803 = vrot.lane.b32.xlu0 %v2039_v34, %s1854_s28  ;;  %v777_v44 = vor.u32 %v776_v41, %v720_v36  ;;  %v1106_v47 = vrot.slane %v1056_v43, 1  ;;  %v1125_v16 = vsel %vm1985_vm2, %v1109_v63, 0  ;;  %v711_v20 = vunpack.c.l.b16 %v687_v11  ;;  %v1760_v61 = vld [vmem:[%s2435_s6 + $0x8] sm:$0x30]  ;;  %v1677_v63 = vld [vmem:[%s2435_s6] sm:$0xf] }
  0x27   : > { %811 = vrot.lane.b32.xlu2 %v2012_v18, %s1854_s28  ;;  %v712_v21 = vunpack.c.l.b16 %v688_v13  ;;  %v1127_v26 = vsel %vm1985_vm2, %v1113_v22, 0  ;;  %v1081_v27 = vshrl.u32 %v2127_v17, 16  ;;  %v1114_v28 = vrot.slane %v1084_v23, 1  ;;  %v1687_v22 = vld [vmem:[%s2435_s6 + $0x10] sm:$0xf] }
  0x28   : > { %v797_v48 = vsel %vm1985_vm2, %v777_v44, 0  ;;  %v1107_v49 = vor.u32 %v1106_v47, %v1053_v42  ;;  %v1020_v44 = vsel %vm2106_vm4, 0, %v1018_v35  ;;  %v1021_v46 = vsel %vm2106_vm4, 0, %v1019_v39 }
  0x29   : > { %821 = vrot.lane.b32.xlu1 %v797_v48, %s1855_s25  ;;  %v2139_v25 = vpack.c.b16 %v712_v21, %v711_v20  ;;  %v1115_v30 = vor.u32 %v1114_v28, %v1081_v27  ;;  %v1044_v48 = vunpack.c.l.b16 %v1020_v44  ;;  %v1678_v11 = vor.u32 %v1759_v2, %v1677_v63 }
  0x2a   : > { %v1124_v53 = vsel %vm1985_vm2, %v1107_v49, 0  ;;  %v1045_v49 = vunpack.c.l.b16 %v1021_v46 }
  0x2b   : > { %v758_v29 = vshll.u32 %v2139_v25, 16  ;;  %v755_v32 = vshrl.u32 %v2139_v25, 16  ;;  %v1128_v41 = vsel %vm1985_vm2, %v1115_v30, 0  ;;  %v925_v15 = vsel %vm884_vm5, %v1678_v11, 0  ;;  %v1766_v30 = vld [vmem:[%s2436_s7] sm:$0x30] }
  0x2c   : > { %v2177_v55 = vpack.c.b16 %v1045_v49, %v1044_v48  ;;  %1770 = vmatpush.bf16.msra.mxu3 %v925_v15  ;;  %934 = vmatpush.bf16.msra.mxu1 %v925_v15  ;;  %v1767_v48 = vld [vmem:[%s2436_s7 + $0x8] sm:$0x30]  ;;  %v1731_v49 = vld [vmem:[%s2436_s7 + $0x10] sm:$0xf] }
  0x2d   : > { %v786_v33 = vrot.slane %v758_v29, 1 }
  0x2e   : > { %829 = vrot.lane.b32.xlu0 %v801_v51, %s1855_s25  ;;  %v1091_v10 = vshll.u32 %v2177_v55, 16 }
  0x2f   : > { %1148 = vrot.lane.b32.xlu2 %v1124_v53, %s1855_s25  ;;  %v787_v47 = vor.u32 %v786_v33, %v755_v32  ;;  %v729_v53 = vrot.slane %v727_v8, 7  ;;  %v1670_v8 = vor.u32 %v1760_v61, %v1669_v60  ;;  %v1712_v33 = vor.u32 %v1766_v30, %v1711_v12 }
  0x30   : > { %v1116_v13 = vrot.slane %v1091_v10, 1 }
  0x31   : > { %1130 = vrot.lane.b32.xlu1 %v2048_v40, %s1854_s28  ;;  %v802_v51 = vsel %vm1985_vm2, %v787_v47, 0  ;;  %v732_v57 = vor.u32 %v730_v9, %v729_v53  ;;  %v886_v62 = vsel %vm884_vm5, %v1670_v8, 0  ;;  %v1088_v9 = vshrl.u32 %v2177_v55, 16  ;;  %v1721_v47 = vld [vmem:[%s2436_s7 + $0x8] sm:$0xf] }
  0x32   : > { %895 = vmatpush.bf16.msra.mxu0 %v886_v62  ;;  %1769 = vmatpush.bf16.msra.mxu2 %v886_v62  ;;  %v1768_v53 = vld [vmem:[%s2436_s7 + $0x10] sm:$0x30]  ;;  %v743_v8 = vrot.slane %v741_v3, 7  ;;  %v736_v62 = vrot.slane %v734_v5, 7  ;;  %v722_v3 = vrot.slane %v720_v36, 7 }
  0x34   : > { %v746_v11 = vor.u32 %v744_v4, %v743_v8  ;;  %v725_v4 = vor.u32 %v723_v37, %v722_v3  ;;  %v1076_v8 = vrot.slane %v1074_v14, 7 }
  0x36   : > { %1132 = vrot.lane.b32.xlu0 %v2065_v45, %s1854_s28  ;;  %v773_v15 = vsel %vm2207_vm8, 0, %v746_v11  ;;  %v770_v36 = vsel %vm2207_vm8, 0, %v725_v4  ;;  %v1069_v45 = vrot.slane %v1067_v7, 7  ;;  %v1083_v11 = vrot.slane %v1081_v27, 7 }
  0x37   : > { %1134 = vrot.lane.b32.xlu2 %v2084_v52, %s1854_s28  ;;  %v1079_v52 = vor.u32 %v1077_v59, %v1076_v8  ;;  %v757_v59 = vrot.slane %v755_v32, 7 }
  0x39   : > { %1150 = vrot.lane.b32.xlu1 %v1125_v16, %s1855_s25  ;;  %v1117_v16 = vor.u32 %v1116_v13, %v1088_v9  ;;  %v739_v13 = vor.u32 %v737_v6, %v736_v62  ;;  %v750_v6 = vrot.slane %v748_v38, 7  ;;  %v1062_v38 = vrot.slane %v1060_v54, 7 }
  0x3a   : > { %v760_v27 = vor.u32 %v758_v29, %v757_v59 }
  0x3b   : > { %v1129_v19 = vsel %vm1985_vm2, %v1117_v16, 0  ;;  %v772_v16 = vsel %vm2207_vm8, 0, %v739_v13 }
  0x3e   : > { %1152 = vrot.lane.b32.xlu0 %v1126_v24, %s1855_s25  ;;  %v1761_v24 = vld [vmem:[%s2435_s6 + $0x10] sm:$0x30] }
  0x3f   : > { %1154 = vrot.lane.b32.xlu2 %v1127_v26, %s1855_s25  ;;  %v771_v26 = vsel %vm2207_vm8, 0, %v732_v57  ;;  %v1688_v28 = vor.u32 %v1761_v24, %v1687_v22  ;;  %v1732_v57 = vor.u32 %v1768_v53, %v1731_v49  ;;  %v753_v24 = vor.u32 %v751_v31, %v750_v6 }
  0x40   : > { %v1055_v31 = vrot.slane %v1053_v42, 7 }
  0x41   : > { %1136 = vrot.lane.b32.xlu1 %v2095_v56, %s1854_s28  ;;  %v967_v35 = vsel %vm884_vm5, %v1688_v28, 0  ;;  %v1306_v61 = vsel %vm884_vm5, %v1732_v57, 0  ;;  %v774_v30 = vsel %vm2207_vm8, 0, %v753_v24  ;;  %v1086_v56 = vor.u32 %v1084_v23, %v1083_v11 }
  0x42   : > { %976 = vmatpush.bf16.msrb.mxu2 %v967_v35  ;;  %1315 = vmatpush.bf16.msrb.mxu1 %v1306_v61 }
  0x46   : > { %1138 = vrot.lane.b32.xlu0 %v2127_v17, %s1854_s28  ;;  %v775_v17 = vsel %vm2207_vm8, 0, %v760_v27 }
  0x47   : > { %813 = vrot.lane.b32.xlu2 %v2139_v25, %s1854_s28 }
  0x49   : > { %1156 = vrot.lane.b32.xlu1 %v1128_v41, %s1855_s25  ;;  %v1206_v41 = vsel %vm884_vm5, %v1712_v33, 0 }
  0x4a   : > { %1215 = vmatpush.bf16.msrb.mxu3 %v1206_v41 }
  0x4e   : > { %831 = vrot.lane.b32.xlu0 %v802_v51, %s1855_s25  ;;  %v1722_v51 = vor.u32 %v1767_v48, %v1721_v47 }
  0x4f   : > { %1158 = vrot.lane.b32.xlu2 %v1129_v19, %s1855_s25 }
  0x50   : > { %v1256_v60 = vsel %vm884_vm5, %v1722_v51, 0 }
  0x51   : > { %1140 = vrot.lane.b32.xlu1 %v2177_v55, %s1854_s28  ;;  %1265 = vmatpush.bf16.msrb.mxu0 %v1256_v60 }
  0x71   : > { %v806_v21 = vpop.permute.xlu2 %805 }
  0x72   : > { %v839_v39 = vsel %vm833_vm9, %v771_v26, %v806_v21 }
  0x79   : > { %v824_v44 = vpop.permute.xlu2 %823 }
  0x7a   : > { %v856_v46 = vsel %vm852_vm10, %v839_v39, %v824_v44  ;;  %v1065_v39 = vor.u32 %v1063_v50, %v1062_v38  ;;  %v1058_v44 = vor.u32 %v1056_v43, %v1055_v31  ;;  %v1072_v43 = vor.u32 %v1070_v58, %v1069_v45 }
  0x7b   : > { %1671 = vmatmul.msk.bf16.vlgmr.msra.gmra.mxu0 %vm875_vm11, %v856_v46  ;;  %v1103_v58 = vsel %vm2207_vm8, 0, %v1079_v52 }
  0x7c   : > { %v1101_v54 = vsel %vm2207_vm8, 0, %v1065_v39  ;;  %v1100_v42 = vsel %vm2207_vm8, 0, %v1058_v44  ;;  %v1102_v7 = vsel %vm2207_vm8, 0, %v1072_v43 }
  0x81   : > { %v812_v34 = vpop.permute.xlu2 %811 }
  0x82   : > { %v848_v33 = vsel %vm833_vm9, %v774_v30, %v812_v34 }
  0x88   : > { %v810_v63 = vpop.permute.xlu0 %809  ;;  %v808_v2 = vpop.permute.xlu1 %807 }
  0x89   : > { %v845_v19 = vsel %vm833_vm9, %v773_v15, %v810_v63  ;;  %v842_v5 = vsel %vm833_vm9, %v772_v16, %v808_v2  ;;  %v1149_v49 = vpop.permute.xlu2 %1148  ;;  %v1104_v15 = vsel %vm2207_vm8, 0, %v1086_v56 }
  0x90   : > { %v828_v21 = vpop.permute.xlu0 %827  ;;  %v826_v22 = vpop.permute.xlu1 %825 }
  0x91   : > { %v858_v0 = vsel %vm852_vm10, %v842_v5, %v826_v22  ;;  %v860_v1 = vsel %vm852_vm10, %v845_v19, %v828_v21  ;;  %v1135_v57 = vpop.permute.xlu2 %1134  ;;  %v1090_v19 = vrot.slane %v1088_v9, 7 }
  0x92   : > { %1672 = vmatmul.msk.bf16.gmra.mxu0 %vm875_vm11, %v858_v0  ;;  %1673 = vmatmul.msk.bf16.vlgmr.msra.gmra.mxu2 %vm875_vm11, %v860_v1  ;;  %v1168_v60 = vsel %vm833_vm9, %v1102_v7, %v1135_v57 }
  0x93   : > { %1681 = vmatmul.msk.bf16.vlgmr.msra.gmra.mxu3 %vm875_vm11, %v858_v0  ;;  %v1093_v29 = vor.u32 %v1091_v10, %v1090_v19 }
  0x95   : > { %v1105_v22 = vsel %vm2207_vm8, 0, %v1093_v29 }
  0x98   : > { %v804_v12 = vpop.permute.xlu0 %803 }
  0x99   : > { %v836_v26 = vsel %vm833_vm9, %v770_v36, %v804_v12  ;;  %v1155_v2 = vpop.permute.xlu2 %1154 }
  0x9b   : > { %v822_v28 = vpop.permute.xlu1 %821 }
  0x9c   : > { %v854_v37 = vsel %vm852_vm10, %v836_v26, %v822_v28 }
  0x9d   : > { %1679 = vmatmul.msk.bf16.vlgmr.msra.gmra.mxu1 %vm875_vm11, %v854_v37 }
  0xa0   : > { %v830_v35 = vpop.permute.xlu0 %829 }
  0xa1   : > { %v862_v18 = vsel %vm852_vm10, %v848_v33, %v830_v35  ;;  %v814_v23 = vpop.permute.xlu2 %813 }
  0xa2   : > { %1674 = vmatmul.msk.bf16.gmra.mxu2 %vm875_vm11, %v862_v18  ;;  %v851_v5 = vsel %vm833_vm9, %v775_v17, %v814_v23 }
  0xa3   : > { %v1131_v41 = vpop.permute.xlu1 %1130  ;;  %1682 = vmatmul.msk.bf16.gmra.mxu3 %vm875_vm11, %v860_v1 }
  0xa4   : > { %v1162_v53 = vsel %vm833_vm9, %v1100_v42, %v1131_v41 }
  0xa5   : > { %v1179_v40 = vsel %vm852_vm10, %v1162_v53, %v1149_v49 }
  0xa8   : > { %v1133_v47 = vpop.permute.xlu0 %1132 }
  0xa9   : > { %v1165_v48 = vsel %vm833_vm9, %v1101_v54, %v1133_v47 }
  0xab   : > { %v1151_v51 = vpop.permute.xlu1 %1150 }
  0xac   : > { %v1181_v50 = vsel %vm852_vm10, %v1165_v48, %v1151_v51  ;;  %v2374_v51 = vld [vmem:[%s2437_s8] ss:$0 sm:$0xff] }
  0xad   : > { %1680 = vmatmul.msk.bf16.gmra.mxu1 %vm875_vm11, %v856_v46  ;;  %1723 = vmatmul.msk.bf16.vlgmr.msrb.gmra.mxu0 %vm875_vm11, %v1181_v50 }
  0xb0   : > { %v1153_v61 = vpop.permute.xlu0 %1152 }
  0xb1   : > { %v1183_v46 = vsel %vm852_vm10, %v1168_v60, %v1153_v61 }
  0xb2   : > { %1689 = vmatmul.msk.bf16.vlgmr.msrb.gmra.mxu2 %vm875_vm11, %v858_v0 }
  0xb3   : > { %1713 = vmatmul.msk.bf16.vlgmr.msrb.gmra.mxu3 %vm875_vm11, %v1179_v40  ;;  %v1137_v62 = vpop.permute.xlu1 %1136 }
  0xb4   : > { %v1171_v63 = vsel %vm833_vm9, %v1103_v58, %v1137_v62 }
  0xb5   : > { %v1185_v14 = vsel %vm852_vm10, %v1171_v63, %v1155_v2 }
  0xb8   : > { %v1139_v13 = vpop.permute.xlu0 %1138 }
  0xb9   : > { %v1174_v16 = vsel %vm833_vm9, %v1104_v15, %v1139_v13 }
  0xbb   : > { %v1157_v3 = vpop.permute.xlu1 %1156 }
  0xbc   : > { %v1187_v32 = vsel %vm852_vm10, %v1174_v16, %v1157_v3 }
  0xbd   : > { %1724 = vmatmul.msk.bf16.gmra.mxu0 %vm875_vm11, %v1183_v46  ;;  %1733 = vmatmul.msk.bf16.vlgmr.msrb.gmra.mxu1 %vm875_vm11, %v1183_v46 }
  0xc0   : > { %v832_v21 = vpop.permute.xlu0 %831 }
  0xc1   : > { %v864_v25 = vsel %vm852_vm10, %v851_v5, %v832_v21 }
  0xc2   : > { %1690 = vmatmul.msk.bf16.gmra.mxu2 %vm875_vm11, %v860_v1  ;;  %v1159_v1 = vpop.permute.xlu2 %1158 }
  0xc3   : > { %1714 = vmatmul.msk.bf16.gmra.mxu3 %vm875_vm11, %v1181_v50  ;;  %v1141_v9 = vpop.permute.xlu1 %1140 }
  0xc4   : > { %v1177_v0 = vsel %vm833_vm9, %v1105_v22, %v1141_v9 }
  0xc5   : > { %v1189_v4 = vsel %vm852_vm10, %v1177_v0, %v1159_v1 }
  0xcd   : > { %1725 = vmatmul.msk.bf16.gmra.mxu0 %vm875_vm11, %v1185_v14  ;;  %1734 = vmatmul.msk.bf16.gmra.mxu1 %vm875_vm11, %v1185_v14 }
  0xd2   : > { %1691 = vmatmul.msk.bf16.gmra.mxu2 %vm875_vm11, %v862_v18 }
  0xd3   : > { %1715 = vmatmul.msk.bf16.gmra.mxu3 %vm875_vm11, %v1183_v46 }
  0xdd   : > { %1726 = vmatmul.msk.bf16.gmra.mxu0 %vm875_vm11, %v1187_v32  ;;  %1735 = vmatmul.msk.bf16.gmra.mxu1 %vm875_vm11, %v1187_v32 }
  0xe2   : > { %1692 = vmatmul.msk.bf16.gmra.mxu2 %vm875_vm11, %v864_v25 }
  0xe3   : > { %1716 = vmatmul.msk.bf16.gmra.mxu3 %vm875_vm11, %v1185_v14 }
  0xed   : > { %1736 = vmatmul.msk.bf16.gmra.mxu1 %vm875_vm11, %v1189_v4 }
  0xf8   : > { %v897_v6 = vpop.f32.mrf.mxu0 }
 0x100   : > { %v899_v36 = vpop.f32.mrf.mxu0 }
 0x10f   : > { %v902_v10 = vpop.f32.mrf.mxu0 }
 0x115   : > { %v2355_v24 = vpop.f32.mrf.mxu2 }
 0x116   : > { %v2357_v55 = vpop.f32.mrf.mxu3 }
 0x117   : > { %v904_v30 = vpop.f32.mrf.mxu0  ;;  %v947_v1 = vadd.f32 %v2357_v55, %v2355_v24 }
 0x11a   : > { %v936_v12 = vpop.f32.mrf.mxu1 }
 0x11b   : > { %v937_v39 = vadd.f32 %v936_v12, %v897_v6 }
 0x11d   : > { %v2359_v26 = vpop.f32.mrf.mxu2 }
 0x11e   : > { %v2361_v20 = vpop.f32.mrf.mxu3 }
 0x122   : > { %v938_v28 = vpop.f32.mrf.mxu1 }
 0x123   : > { %v939_v45 = vadd.f32 %v938_v28, %v899_v36 }
 0x125   : > { %v2363_v34 = vpop.f32.mrf.mxu2 }
 0x126   : > { %v2365_v37 = vpop.f32.mrf.mxu3 }
 0x12a   : > { %v941_v38 = vpop.f32.mrf.mxu1  ;;  %v1267_v33 = vpop.f32.mrf.mxu0 }
 0x12b   : > { %v942_v58 = vadd.f32 %v941_v38, %v902_v10 }
 0x12d   : > { %v2367_v35 = vpop.f32.mrf.mxu2 }
 0x12e   : > { %v2369_v18 = vpop.f32.mrf.mxu3 }
 0x132   : > { %v943_v31 = vpop.f32.mrf.mxu1  ;;  %v1269_v41 = vpop.f32.mrf.mxu0 }
 0x133   : > { %v944_v3 = vadd.f32 %v943_v31, %v904_v30 }
 0x135   : > { %v978_v44 = vpop.f32.mrf.mxu2 }
 0x136   : > { %v998_v54 = vadd.f32 %v978_v44, %v937_v39  ;;  %v1217_v47 = vpop.f32.mrf.mxu3  ;;  %v949_v39 = vadd.f32 %v2361_v20, %v2359_v26 }
 0x138   : > { %v1237_v48 = vadd.f32 %v1217_v47, %v998_v54 }
 0x13a   : > { %v1287_v42 = vadd.f32 %v1267_v33, %v1237_v48  ;;  %v1317_v49 = vpop.f32.mrf.mxu1  ;;  %v1272_v57 = vpop.f32.mrf.mxu0 }
 0x13c   : > { %v1337_v50 = vadd.f32 %v1317_v49, %v1287_v42 }
 0x13d   : > { %v980_v53 = vpop.f32.mrf.mxu2 }
 0x13e   : > { %v1349_v40 = vadd.f32 %v2374_v51, %v1337_v50  ;;  %v999_v43 = vadd.f32 %v980_v53, %v939_v45  ;;  %v1219_v7 = vpop.f32.mrf.mxu3  ;;  %v952_v53 = vadd.f32 %v2365_v37, %v2363_v34 }
 0x140   : > { %v1357_v60 = vmax.f32 %v1349_v40, 0.0  ;;  %v1238_v61 = vadd.f32 %v1219_v7, %v999_v43 }
 0x142   : > { %v1365_v46 = vpack.c.bf16 %v1357_v60, %v1357_v60  ;;  %v1288_v8 = vadd.f32 %v1269_v41, %v1238_v61  ;;  %v1319_v52 = vpop.f32.mrf.mxu1  ;;  %v1274_v13 = vpop.f32.mrf.mxu0 }
 0x144   : > { %1374 = vst.msk [vmem:[%s2381_s10] sm:$0xf] %vm1373_vm12, %v1365_v46  ;;  %v1338_v62 = vadd.f32 %v1319_v52, %v1288_v8 }
 0x145   : > { %v983_v63 = vpop.f32.mrf.mxu2 }
 0x146   : > { %v1350_v2 = vadd.f32 %v2374_v51, %v1338_v62  ;;  %v1000_v14 = vadd.f32 %v983_v63, %v942_v58  ;;  %v1222_v11 = vpop.f32.mrf.mxu3  ;;  %v954_v58 = vadd.f32 %v2369_v18, %v2367_v35 }
 0x148   : > { %v1358_v56 = vmax.f32 %v1350_v2, 0.0  ;;  %v1239_v59 = vadd.f32 %v1222_v11, %v1000_v14 }
 0x14a   : > { %v1366_v15 = vpack.c.bf16 %v1358_v56, %v1358_v56  ;;  %v1289_v27 = vadd.f32 %v1272_v57, %v1239_v59  ;;  %v1322_v16 = vpop.f32.mrf.mxu1  ;;  %v1277_v0 = vpop.f32.mrf.mxu0 }
 0x14c   : > { %1375 = vst.msk [vmem:[%s2381_s10 + $0x4] sm:$0xf] %vm1373_vm12, %v1366_v15  ;;  %v1339_v17 = vadd.f32 %v1322_v16, %v1289_v27 }
 0x14d   : > { %v985_v23 = vpop.f32.mrf.mxu2 }
 0x14e   : > { %v1351_v32 = vadd.f32 %v2374_v51, %v1339_v17  ;;  %v1001_v19 = vadd.f32 %v985_v23, %v944_v3  ;;  %v1224_v5 = vpop.f32.mrf.mxu3 }
 0x150   : > { %v1359_v21 = vmax.f32 %v1351_v32, 0.0  ;;  %v1240_v25 = vadd.f32 %v1224_v5, %v1001_v19 }
 0x152   : > { %v1367_v29 = vpack.c.bf16 %v1359_v21, %v1359_v21  ;;  %v1290_v22 = vadd.f32 %v1274_v13, %v1240_v25  ;;  %v1324_v9 = vpop.f32.mrf.mxu1  ;;  %v1279_v55 = vpop.f32.mrf.mxu0 }
 0x154   : > { %1376 = vst.msk [vmem:[%s2381_s10 + $0x8] sm:$0xf] %vm1373_vm12, %v1367_v29  ;;  %v1340_v4 = vadd.f32 %v1324_v9, %v1290_v22 }
 0x155   : > { %v988_v6 = vpop.f32.mrf.mxu2 }
 0x156   : > { %v1352_v36 = vadd.f32 %v2374_v51, %v1340_v4  ;;  %v1002_v10 = vadd.f32 %v988_v6, %v947_v1  ;;  %v1227_v12 = vpop.f32.mrf.mxu3 }
 0x158   : > { %v1360_v28 = vmax.f32 %v1352_v36, 0.0  ;;  %v1241_v30 = vadd.f32 %v1227_v12, %v1002_v10 }
 0x15a   : > { %v1368_v38 = vpack.c.bf16 %v1360_v28, %v1360_v28  ;;  %v1291_v33 = vadd.f32 %v1277_v0, %v1241_v30  ;;  %v1327_v31 = vpop.f32.mrf.mxu1  ;;  %v1282_v57 = vpop.f32.mrf.mxu0 }
 0x15c   : > { %1377 = vst.msk [vmem:[%s2381_s10 + $0xc] sm:$0xf] %vm1373_vm12, %v1368_v38  ;;  %v1341_v24 = vadd.f32 %v1327_v31, %v1291_v33 }
 0x15d   : > { %v990_v41 = vpop.f32.mrf.mxu2 }
 0x15e   : > { %v1353_v44 = vadd.f32 %v2374_v51, %v1341_v24  ;;  %v1003_v54 = vadd.f32 %v990_v41, %v949_v39  ;;  %v1229_v47 = vpop.f32.mrf.mxu3 }
 0x160   : > { %v1361_v48 = vmax.f32 %v1353_v44, 0.0  ;;  %v1242_v42 = vadd.f32 %v1229_v47, %v1003_v54 }
 0x162   : > { %v1369_v49 = vpack.c.bf16 %v1361_v48, %v1361_v48  ;;  %v1292_v45 = vadd.f32 %v1279_v55, %v1242_v42  ;;  %v1329_v50 = vpop.f32.mrf.mxu1  ;;  %v1284_v56 = vpop.f32.mrf.mxu0 }
 0x164   : > { %1378 = vst.msk [vmem:[%s2381_s10 + $0x10] sm:$0xf] %vm1373_vm12, %v1369_v49  ;;  %v1342_v26 = vadd.f32 %v1329_v50, %v1292_v45 }
 0x165   : > { %v993_v20 = vpop.f32.mrf.mxu2 }
 0x166   : > { %v1354_v40 = vadd.f32 %v2374_v51, %v1342_v26  ;;  %v1004_v43 = vadd.f32 %v993_v20, %v952_v53  ;;  %v1232_v7 = vpop.f32.mrf.mxu3 }
 0x168   : > { %v1362_v60 = vmax.f32 %v1354_v40, 0.0  ;;  %v1243_v61 = vadd.f32 %v1232_v7, %v1004_v43 }
 0x16a   : > { %v1370_v46 = vpack.c.bf16 %v1362_v60, %v1362_v60  ;;  %v1293_v8 = vadd.f32 %v1282_v57, %v1243_v61  ;;  %v1332_v52 = vpop.f32.mrf.mxu1 }
 0x16c   : > { %1379 = vst.msk [vmem:[%s2381_s10 + $0x14] sm:$0xf] %vm1373_vm12, %v1370_v46  ;;  %v1343_v34 = vadd.f32 %v1332_v52, %v1293_v8 }
 0x16d   : > { %v995_v37 = vpop.f32.mrf.mxu2 }
 0x16e   : > { %v1355_v62 = vadd.f32 %v2374_v51, %v1343_v34  ;;  %v1005_v63 = vadd.f32 %v995_v37, %v954_v58  ;;  %v1234_v2 = vpop.f32.mrf.mxu3 }
 0x170   : > { %v1363_v14 = vmax.f32 %v1355_v62, 0.0  ;;  %v1244_v11 = vadd.f32 %v1234_v2, %v1005_v63 }
 0x172   : > { %v1371_v59 = vpack.c.bf16 %v1363_v14, %v1363_v14  ;;  %v1294_v13 = vadd.f32 %v1284_v56, %v1244_v11  ;;  %v1334_v15 = vpop.f32.mrf.mxu1 }
 0x174   : > { %1380 = vst.msk [vmem:[%s2381_s10 + $0x18] sm:$0xf] %vm1373_vm12, %v1371_v59  ;;  %v1344_v27 = vadd.f32 %v1334_v15, %v1294_v13 }
 0x176   : > { %v1356_v35 = vadd.f32 %v2374_v51, %v1344_v27 }
 0x178   : > { %v1364_v18 = vmax.f32 %v1356_v35, 0.0 }
 0x17a   : > { %v1372_v16 = vpack.c.bf16 %v1364_v18, %v1364_v18 }
 0x17c   : > { %1381 = vst.msk [vmem:[%s2381_s10 + $0x1c] sm:$0xf] %vm1373_vm12, %v1372_v16 }
 0x17d PF: > { %s19_s13 = sadd.s32 1, %s1852_s13   ;;  %s2448_s30 = smov %s1844_s11 }
 0x17e   : > { %p16_p12 = scmp.ge.s32.totalorder %s19_s13, 10   ;;  %s2449_s10 = smov %s1848_s12 }
 0x17f   : > { %s2450_s11 = smov %s2453_s14  ;;  %s2451_s12 = smov %s2457_s15 }
 0x180   :  { %18 = sbr.rel (!%p16_p12) target bundleno = 3 (0x3), region = 105 }

</bundles_post_ra>
